<compile_context>
chip_gen: v7x
topology: tpu7x:2x2x1
jax: 0.10.0
libtpu: 0.0.40
codegen_flags: <defaults>
</compile_context>

<pallas_src>
import jax
import jax.numpy as jnp
from jax.experimental import pallas as pl
from jax.experimental.pallas import tpu as pltpu

# logical (PyTorch) dims
D_IN = 784   # 28*28
D_H = 400
D_Z = 20

# lane-padded dims (multiples of 128)
D_IN_P = 896
D_H_P = 512
D_Z_P = 128


def _round_up(x, m):
    return (x + m - 1) // m * m


def _vae_kernel(x_ref, eps_ref,
                w1_ref, b1_ref,
                w2m_ref, b2m_ref,
                w2v_ref, b2v_ref,
                w3_ref, b3_ref,
                w4_ref, b4_ref,
                recon_ref, mu_ref, logvar_ref):
    x = x_ref[...]                      # [TB, 896] bf16 (padded cols are zero)
    eps = eps_ref[...]                  # [TB, 128] f32  (padded cols are zero)

    # --- encode: fc1 + relu (bf16 MXU, f32 accumulate) ---
    h1 = jnp.dot(x, w1_ref[...], preferred_element_type=jnp.float32) + b1_ref[...]
    h1 = jnp.maximum(h1, 0.0)
    h1_bf = h1.astype(jnp.bfloat16)

    # --- heads: padded to N=128, valid lanes 0..19, padded lanes produce 0 ---
    mu = jnp.dot(h1_bf, w2m_ref[...], preferred_element_type=jnp.float32) + b2m_ref[...]
    logvar = jnp.dot(h1_bf, w2v_ref[...], preferred_element_type=jnp.float32) + b2v_ref[...]

    # --- reparametrization (matches PyTorch source: std = 0.5 * exp(logvar)) ---
    # padded lanes: logvar=0 -> std=0.5, eps=0 -> z padded lanes are exactly 0.
    std = 0.5 * jnp.exp(logvar)
    z = eps * std + mu                  # [TB, 128] f32

    # --- decode: fc3 + relu, fc4 + sigmoid ---
    h3 = jnp.dot(z.astype(jnp.bfloat16), w3_ref[...],
                 preferred_element_type=jnp.float32) + b3_ref[...]
    h3 = jnp.maximum(h3, 0.0)
    logits = jnp.dot(h3.astype(jnp.bfloat16), w4_ref[...],
                     preferred_element_type=jnp.float32) + b4_ref[...]
    # sigmoid: exp on EUP, approx reciprocal on EUP (keeps the VPU free in the epilogue)
    recon_ref[...] = pl.reciprocal(1.0 + jnp.exp(-logits), approx=True)

    mu_ref[...] = mu                    # lane-dense 128-wide stores; wrapper slices [:, :20]
    logvar_ref[...] = logvar


def vae_forward(x, eps, packed_params, tile_b=128):
    """x: [B, 784] f32, eps: [B, 20] f32 standard-normal noise.
    packed_params: output of pack_params().
    Returns (recon [B,784] f32, mu [B,20] f32, logvar [B,20] f32)."""
    B = x.shape[0]
    tile_b = min(tile_b, _round_up(B, 8))       # small batches -> single small tile
    B_pad = _round_up(B, tile_b)
    grid = (B_pad // tile_b,)

    # zero-pad activations to lane-aligned shapes; matmul operands in bf16
    x_p = jnp.zeros((B_pad, D_IN_P), jnp.bfloat16).at[:B, :D_IN].set(
        x.astype(jnp.bfloat16))
    eps_p = jnp.zeros((B_pad, D_Z_P), jnp.float32).at[:B, :D_Z].set(eps)

    batch_in_specs = [
        pl.BlockSpec((tile_b, D_IN_P), lambda i: (i, 0)),   # x tile
        pl.BlockSpec((tile_b, D_Z_P), lambda i: (i, 0)),    # eps tile
    ]
    # weights/biases: full arrays, constant block index -> resident in VMEM
    param_specs = [pl.BlockSpec(p.shape, lambda i: (0, 0)) for p in packed_params]

    out_specs = (
        pl.BlockSpec((tile_b, D_IN_P), lambda i: (i, 0)),
        pl.BlockSpec((tile_b, D_Z_P), lambda i: (i, 0)),
        pl.BlockSpec((tile_b, D_Z_P), lambda i: (i, 0)),
    )
    out_shape = (
        jax.ShapeDtypeStruct((B_pad, D_IN_P), jnp.float32),
        jax.ShapeDtypeStruct((B_pad, D_Z_P), jnp.float32),
        jax.ShapeDtypeStruct((B_pad, D_Z_P), jnp.float32),
    )

    param_bytes = sum(int(p.size) * p.dtype.itemsize for p in packed_params)
    cost = pl.CostEstimate(
        flops=2 * B_pad * (D_IN_P * D_H_P + 2 * D_H_P * D_Z_P
                           + D_Z_P * D_H_P + D_H_P * D_IN_P),
        transcendentals=B_pad * (D_Z_P + D_IN_P),
        bytes_accessed=(int(x_p.size) * 2 + int(eps_p.size) * 4 + param_bytes
                        + B_pad * (D_IN_P + 2 * D_Z_P) * 4),
    )

    recon_p, mu_p, logvar_p = pl.pallas_call(
        _vae_kernel,
        grid=grid,
        in_specs=batch_in_specs + param_specs,
        out_specs=out_specs,
        out_shape=out_shape,
        compiler_params=pltpu.CompilerParams(
            dimension_semantics=("parallel",)),
        cost_estimate=cost,
    )(x_p, eps_p, *packed_params)

    return recon_p[:B, :D_IN], mu_p[:B, :D_Z], logvar_p[:B, :D_Z]


def init_params(key):
    """PyTorch-Linear-style init: U(-1/sqrt(fan_in), 1/sqrt(fan_in)).
    Weights are stored as [in, out] (transposed vs. torch); biases as [1, out]."""
    def linear(k, fan_in, fan_out):
        kw, kb = jax.random.split(k)
        bound = 1.0 / jnp.sqrt(jnp.float32(fan_in))
        w = jax.random.uniform(kw, (fan_in, fan_out), jnp.float32, -bound, bound)
        b = jax.random.uniform(kb, (1, fan_out), jnp.float32, -bound, bound)
        return w, b

    k1, k2, k3, k4, k5 = jax.random.split(key, 5)
    w1, b1 = linear(k1, D_IN, D_H)      # fc1
    w2m, b2m = linear(k2, D_H, D_Z)     # fc2_mean
    w2v, b2v = linear(k3, D_H, D_Z)     # fc2_logvar
    w3, b3 = linear(k4, D_Z, D_H)       # fc3
    w4, b4 = linear(k5, D_H, D_IN)      # fc4
    return (w1, b1, w2m, b2m, w2v, b2v, w3, b3, w4, b4)


def pack_params(params):
    """Zero-pad every dim to a multiple of 128 and cast weights to bf16 (biases f32)."""
    (w1, b1, w2m, b2m, w2v, b2v, w3, b3, w4, b4) = params

    def pad_w(w, r, c):
        return (jnp.zeros((r, c), jnp.float32)
                .at[:w.shape[0], :w.shape[1]].set(w).astype(jnp.bfloat16))

    def pad_b(b, c):
        return jnp.zeros((1, c), jnp.float32).at[:, :b.shape[1]].set(b)

    return (
        pad_w(w1, D_IN_P, D_H_P), pad_b(b1, D_H_P),
        pad_w(w2m, D_H_P, D_Z_P), pad_b(b2m, D_Z_P),
        pad_w(w2v, D_H_P, D_Z_P), pad_b(b2v, D_Z_P),
        pad_w(w3, D_Z_P, D_H_P), pad_b(b3, D_H_P),
        pad_w(w4, D_H_P, D_IN_P), pad_b(b4, D_IN_P),
    )


def reference_forward(x, eps, params):
    """Pure-JAX reference mirroring the kernel's bf16-matmul / f32-accumulate numerics."""
    (w1, b1, w2m, b2m, w2v, b2v, w3, b3, w4, b4) = params

    def dot(a, w):
        return jnp.dot(a.astype(jnp.bfloat16), w.astype(jnp.bfloat16),
                       preferred_element_type=jnp.float32)

    h1 = jax.nn.relu(dot(x, w1) + b1)
    mu = dot(h1, w2m) + b2m
    logvar = dot(h1, w2v) + b2v
    std = 0.5 * jnp.exp(logvar)
    z = eps * std + mu
    h3 = jax.nn.relu(dot(z, w3) + b3)
    recon = jax.nn.sigmoid(dot(h3, w4) + b4)
    return recon, mu, logvar


if __name__ == "__main__":
    key = jax.random.PRNGKey(0)
    k_param, k_x, k_eps = jax.random.split(key, 3)

    B = 8  # small demo batch
    params = init_params(k_param)
    packed = pack_params(params)
    x = jax.random.uniform(k_x, (B, D_IN), jnp.float32)       # MNIST-like input in [0,1)
    eps = jax.random.normal(k_eps, (B, D_Z), jnp.float32)     # pre-drawn standard normal

    fwd = jax.jit(vae_forward)
    recon, mu, logvar = fwd(x, eps, packed)
    jax.block_until_ready((recon, mu, logvar))

    # sanity check against a pure-JAX reference with matching bf16 matmul precision
    r_ref, mu_ref, lv_ref = reference_forward(x, eps, params)
    assert recon.shape == (B, D_IN) and mu.shape == (B, D_Z) and logvar.shape == (B, D_Z)
    assert jnp.allclose(mu, mu_ref, atol=2e-2, rtol=2e-2)
    assert jnp.allclose(logvar, lv_ref, atol=2e-2, rtol=2e-2)
    assert jnp.allclose(recon, r_ref, atol=2e-2, rtol=2e-2)

    print("KERNEL_OK")
</pallas_src>

<mosaic_0001>
module attributes {stable_mosaic.version = 11 : i64} {
  func.func @_vae_kernel(%arg0: i32, %arg1: memref<8x896xbf16, #tpu.memory_space<vmem>>, %arg2: memref<8x128xf32, #tpu.memory_space<vmem>>, %arg3: memref<896x512xbf16, #tpu.memory_space<vmem>>, %arg4: memref<1x512xf32, #tpu.memory_space<vmem>>, %arg5: memref<512x128xbf16, #tpu.memory_space<vmem>>, %arg6: memref<1x128xf32, #tpu.memory_space<vmem>>, %arg7: memref<512x128xbf16, #tpu.memory_space<vmem>>, %arg8: memref<1x128xf32, #tpu.memory_space<vmem>>, %arg9: memref<128x512xbf16, #tpu.memory_space<vmem>>, %arg10: memref<1x512xf32, #tpu.memory_space<vmem>>, %arg11: memref<512x896xbf16, #tpu.memory_space<vmem>>, %arg12: memref<1x896xf32, #tpu.memory_space<vmem>>, %arg13: memref<8x896xf32, #tpu.memory_space<vmem>>, %arg14: memref<8x128xf32, #tpu.memory_space<vmem>>, %arg15: memref<8x128xf32, #tpu.memory_space<vmem>>) attributes {dimension_semantics = [#tpu.dimension_semantics<parallel>], iteration_bounds = array<i64: 1>, scalar_prefetch = 0 : i64, scratch_operands = 0 : i64, tpu.core_type = #tpu.core_type<tc>, window_params = [{transform_indices = @transform_0, window_bounds = array<i64: 8, 896>}, {transform_indices = @transform_1, window_bounds = array<i64: 8, 128>}, {pipeline_mode = #tpu.pipeline_mode<synchronous>, transform_indices = @transform_2, window_bounds = array<i64: 896, 512>}, {pipeline_mode = #tpu.pipeline_mode<synchronous>, transform_indices = @transform_3, window_bounds = array<i64: 1, 512>}, {pipeline_mode = #tpu.pipeline_mode<synchronous>, transform_indices = @transform_4, window_bounds = array<i64: 512, 128>}, {pipeline_mode = #tpu.pipeline_mode<synchronous>, transform_indices = @transform_5, window_bounds = array<i64: 1, 128>}, {pipeline_mode = #tpu.pipeline_mode<synchronous>, transform_indices = @transform_6, window_bounds = array<i64: 512, 128>}, {pipeline_mode = #tpu.pipeline_mode<synchronous>, transform_indices = @transform_7, window_bounds = array<i64: 1, 128>}, {pipeline_mode = #tpu.pipeline_mode<synchronous>, transform_indices = @transform_8, window_bounds = array<i64: 128, 512>}, {pipeline_mode = #tpu.pipeline_mode<synchronous>, transform_indices = @transform_9, window_bounds = array<i64: 1, 512>}, {pipeline_mode = #tpu.pipeline_mode<synchronous>, transform_indices = @transform_10, window_bounds = array<i64: 512, 896>}, {pipeline_mode = #tpu.pipeline_mode<synchronous>, transform_indices = @transform_11, window_bounds = array<i64: 1, 896>}, {transform_indices = @transform_12, window_bounds = array<i64: 8, 896>}, {transform_indices = @transform_13, window_bounds = array<i64: 8, 128>}, {transform_indices = @transform_14, window_bounds = array<i64: 8, 128>}]} {
    %c0 = arith.constant 0 : index
    %c0_0 = arith.constant 0 : index
    %0 = vector.load %arg1[%c0, %c0_0] : memref<8x896xbf16, #tpu.memory_space<vmem>>, vector<8x896xbf16>
    %c0_1 = arith.constant 0 : index
    %c0_2 = arith.constant 0 : index
    %1 = vector.load %arg2[%c0_1, %c0_2] : memref<8x128xf32, #tpu.memory_space<vmem>>, vector<8x128xf32>
    %c0_3 = arith.constant 0 : index
    %c0_4 = arith.constant 0 : index
    %2 = vector.load %arg3[%c0_3, %c0_4] : memref<896x512xbf16, #tpu.memory_space<vmem>>, vector<896x512xbf16>
    %cst = arith.constant dense<0.000000e+00> : vector<8x512xf32>
    %3 = tpu.matmul %0, %2, %cst {dimension_numbers = #tpu.dot_dimension_numbers<[1], [0], [0], [1], [0, 0, 1, 1], [], []>} : vector<8x896xbf16>, vector<896x512xbf16>, vector<8x512xf32> -> vector<8x512xf32>
    %c0_5 = arith.constant 0 : index
    %c0_6 = arith.constant 0 : index
    %4 = vector.load %arg4[%c0_5, %c0_6] : memref<1x512xf32, #tpu.memory_space<vmem>>, vector<1x512xf32>
    %5 = vector.broadcast %4 : vector<1x512xf32> to vector<8x512xf32>
    %6 = arith.addf %3, %5 : vector<8x512xf32>
    %cst_7 = arith.constant 0.000000e+00 : f32
    %7 = vector.broadcast %cst_7 : f32 to vector<8x512xf32>
    %8 = arith.maximumf %6, %7 : vector<8x512xf32>
    %9 = arith.truncf %8 : vector<8x512xf32> to vector<8x512xbf16>
    %c0_8 = arith.constant 0 : index
    %c0_9 = arith.constant 0 : index
    %10 = vector.load %arg5[%c0_8, %c0_9] : memref<512x128xbf16, #tpu.memory_space<vmem>>, vector<512x128xbf16>
    %cst_10 = arith.constant dense<0.000000e+00> : vector<8x128xf32>
    %11 = tpu.matmul %9, %10, %cst_10 {dimension_numbers = #tpu.dot_dimension_numbers<[1], [0], [0], [1], [0, 0, 1, 1], [], []>} : vector<8x512xbf16>, vector<512x128xbf16>, vector<8x128xf32> -> vector<8x128xf32>
    %c0_11 = arith.constant 0 : index
    %c0_12 = arith.constant 0 : index
    %12 = vector.load %arg6[%c0_11, %c0_12] : memref<1x128xf32, #tpu.memory_space<vmem>>, vector<1x128xf32>
    %13 = vector.broadcast %12 : vector<1x128xf32> to vector<8x128xf32>
    %14 = arith.addf %11, %13 : vector<8x128xf32>
    %c0_13 = arith.constant 0 : index
    %c0_14 = arith.constant 0 : index
    %15 = vector.load %arg7[%c0_13, %c0_14] : memref<512x128xbf16, #tpu.memory_space<vmem>>, vector<512x128xbf16>
    %cst_15 = arith.constant dense<0.000000e+00> : vector<8x128xf32>
    %16 = tpu.matmul %9, %15, %cst_15 {dimension_numbers = #tpu.dot_dimension_numbers<[1], [0], [0], [1], [0, 0, 1, 1], [], []>} : vector<8x512xbf16>, vector<512x128xbf16>, vector<8x128xf32> -> vector<8x128xf32>
    %c0_16 = arith.constant 0 : index
    %c0_17 = arith.constant 0 : index
    %17 = vector.load %arg8[%c0_16, %c0_17] : memref<1x128xf32, #tpu.memory_space<vmem>>, vector<1x128xf32>
    %18 = vector.broadcast %17 : vector<1x128xf32> to vector<8x128xf32>
    %19 = arith.addf %16, %18 : vector<8x128xf32>
    %20 = math.exp %19 : vector<8x128xf32>
    %cst_18 = arith.constant 5.000000e-01 : f32
    %21 = vector.broadcast %cst_18 : f32 to vector<8x128xf32>
    %22 = arith.mulf %21, %20 : vector<8x128xf32>
    %23 = arith.mulf %1, %22 : vector<8x128xf32>
    %24 = arith.addf %23, %14 : vector<8x128xf32>
    %25 = arith.truncf %24 : vector<8x128xf32> to vector<8x128xbf16>
    %c0_19 = arith.constant 0 : index
    %c0_20 = arith.constant 0 : index
    %26 = vector.load %arg9[%c0_19, %c0_20] : memref<128x512xbf16, #tpu.memory_space<vmem>>, vector<128x512xbf16>
    %cst_21 = arith.constant dense<0.000000e+00> : vector<8x512xf32>
    %27 = tpu.matmul %25, %26, %cst_21 {dimension_numbers = #tpu.dot_dimension_numbers<[1], [0], [0], [1], [0, 0, 1, 1], [], []>} : vector<8x128xbf16>, vector<128x512xbf16>, vector<8x512xf32> -> vector<8x512xf32>
    %c0_22 = arith.constant 0 : index
    %c0_23 = arith.constant 0 : index
    %28 = vector.load %arg10[%c0_22, %c0_23] : memref<1x512xf32, #tpu.memory_space<vmem>>, vector<1x512xf32>
    %29 = vector.broadcast %28 : vector<1x512xf32> to vector<8x512xf32>
    %30 = arith.addf %27, %29 : vector<8x512xf32>
    %cst_24 = arith.constant 0.000000e+00 : f32
    %31 = vector.broadcast %cst_24 : f32 to vector<8x512xf32>
    %32 = arith.maximumf %30, %31 : vector<8x512xf32>
    %33 = arith.truncf %32 : vector<8x512xf32> to vector<8x512xbf16>
    %c0_25 = arith.constant 0 : index
    %c0_26 = arith.constant 0 : index
    %34 = vector.load %arg11[%c0_25, %c0_26] : memref<512x896xbf16, #tpu.memory_space<vmem>>, vector<512x896xbf16>
    %cst_27 = arith.constant dense<0.000000e+00> : vector<8x896xf32>
    %35 = tpu.matmul %33, %34, %cst_27 {dimension_numbers = #tpu.dot_dimension_numbers<[1], [0], [0], [1], [0, 0, 1, 1], [], []>} : vector<8x512xbf16>, vector<512x896xbf16>, vector<8x896xf32> -> vector<8x896xf32>
    %c0_28 = arith.constant 0 : index
    %c0_29 = arith.constant 0 : index
    %36 = vector.load %arg12[%c0_28, %c0_29] : memref<1x896xf32, #tpu.memory_space<vmem>>, vector<1x896xf32>
    %37 = vector.broadcast %36 : vector<1x896xf32> to vector<8x896xf32>
    %38 = arith.addf %35, %37 : vector<8x896xf32>
    %cst_30 = arith.constant 0.000000e+00 : f32
    %39 = vector.broadcast %cst_30 : f32 to vector<8x896xf32>
    %40 = arith.subf %39, %38 : vector<8x896xf32>
    %41 = math.exp %40 : vector<8x896xf32>
    %cst_31 = arith.constant 1.000000e+00 : f32
    %42 = vector.broadcast %cst_31 : f32 to vector<8x896xf32>
    %43 = arith.addf %42, %41 : vector<8x896xf32>
    %44 = tpu.reciprocal %43 {approx = true} : vector<8x896xf32> -> vector<8x896xf32>
    %c0_32 = arith.constant 0 : index
    %c0_33 = arith.constant 0 : index
    %45 = vector.load %arg13[%c0_32, %c0_33] : memref<8x896xf32, #tpu.memory_space<vmem>>, vector<8x896xf32>
    tpu.vector_store %arg13[%c0_32, %c0_33], %44 {strides = array<i32>} : memref<8x896xf32, #tpu.memory_space<vmem>>, vector<8x896xf32>,
    %c0_34 = arith.constant 0 : index
    %c0_35 = arith.constant 0 : index
    %46 = vector.load %arg14[%c0_34, %c0_35] : memref<8x128xf32, #tpu.memory_space<vmem>>, vector<8x128xf32>
    tpu.vector_store %arg14[%c0_34, %c0_35], %14 {strides = array<i32>} : memref<8x128xf32, #tpu.memory_space<vmem>>, vector<8x128xf32>,
    %c0_36 = arith.constant 0 : index
    %c0_37 = arith.constant 0 : index
    %47 = vector.load %arg15[%c0_36, %c0_37] : memref<8x128xf32, #tpu.memory_space<vmem>>, vector<8x128xf32>
    tpu.vector_store %arg15[%c0_36, %c0_37], %19 {strides = array<i32>} : memref<8x128xf32, #tpu.memory_space<vmem>>, vector<8x128xf32>,
    return
  }
  func.func @transform_0(%arg0: i32) -> (i32, i32) {
    %c0_i32 = arith.constant 0 : i32
    %c0_i32_0 = arith.constant 0 : i32
    return %arg0, %c0_i32 : i32, i32
  }
  func.func @transform_1(%arg0: i32) -> (i32, i32) {
    %c0_i32 = arith.constant 0 : i32
    %c0_i32_0 = arith.constant 0 : i32
    return %arg0, %c0_i32 : i32, i32
  }
  func.func @transform_2(%arg0: i32) -> (i32, i32) {
    %c0_i32 = arith.constant 0 : i32
    %c0_i32_0 = arith.constant 0 : i32
    %c0_i32_1 = arith.constant 0 : i32
    return %c0_i32, %c0_i32_0 : i32, i32
  }
  func.func @transform_3(%arg0: i32) -> (i32, i32) {
    %c0_i32 = arith.constant 0 : i32
    %c0_i32_0 = arith.constant 0 : i32
    %c0_i32_1 = arith.constant 0 : i32
    return %c0_i32, %c0_i32_0 : i32, i32
  }
  func.func @transform_4(%arg0: i32) -> (i32, i32) {
    %c0_i32 = arith.constant 0 : i32
    %c0_i32_0 = arith.constant 0 : i32
    %c0_i32_1 = arith.constant 0 : i32
    return %c0_i32, %c0_i32_0 : i32, i32
  }
  func.func @transform_5(%arg0: i32) -> (i32, i32) {
    %c0_i32 = arith.constant 0 : i32
    %c0_i32_0 = arith.constant 0 : i32
    %c0_i32_1 = arith.constant 0 : i32
    return %c0_i32, %c0_i32_0 : i32, i32
  }
  func.func @transform_6(%arg0: i32) -> (i32, i32) {
    %c0_i32 = arith.constant 0 : i32
    %c0_i32_0 = arith.constant 0 : i32
    %c0_i32_1 = arith.constant 0 : i32
    return %c0_i32, %c0_i32_0 : i32, i32
  }
  func.func @transform_7(%arg0: i32) -> (i32, i32) {
    %c0_i32 = arith.constant 0 : i32
    %c0_i32_0 = arith.constant 0 : i32
    %c0_i32_1 = arith.constant 0 : i32
    return %c0_i32, %c0_i32_0 : i32, i32
  }
  func.func @transform_8(%arg0: i32) -> (i32, i32) {
    %c0_i32 = arith.constant 0 : i32
    %c0_i32_0 = arith.constant 0 : i32
    %c0_i32_1 = arith.constant 0 : i32
    return %c0_i32, %c0_i32_0 : i32, i32
  }
  func.func @transform_9(%arg0: i32) -> (i32, i32) {
    %c0_i32 = arith.constant 0 : i32
    %c0_i32_0 = arith.constant 0 : i32
    %c0_i32_1 = arith.constant 0 : i32
    return %c0_i32, %c0_i32_0 : i32, i32
  }
  func.func @transform_10(%arg0: i32) -> (i32, i32) {
    %c0_i32 = arith.constant 0 : i32
    %c0_i32_0 = arith.constant 0 : i32
    %c0_i32_1 = arith.constant 0 : i32
    return %c0_i32, %c0_i32_0 : i32, i32
  }
  func.func @transform_11(%arg0: i32) -> (i32, i32) {
    %c0_i32 = arith.constant 0 : i32
    %c0_i32_0 = arith.constant 0 : i32
    %c0_i32_1 = arith.constant 0 : i32
    return %c0_i32, %c0_i32_0 : i32, i32
  }
  func.func @transform_12(%arg0: i32) -> (i32, i32) {
    %c0_i32 = arith.constant 0 : i32
    %c0_i32_0 = arith.constant 0 : i32
    return %arg0, %c0_i32 : i32, i32
  }
  func.func @transform_13(%arg0: i32) -> (i32, i32) {
    %c0_i32 = arith.constant 0 : i32
    %c0_i32_0 = arith.constant 0 : i32
    return %arg0, %c0_i32 : i32, i32
  }
  func.func @transform_14(%arg0: i32) -> (i32, i32) {
    %c0_i32 = arith.constant 0 : i32
    %c0_i32_0 = arith.constant 0 : i32
    return %arg0, %c0_i32 : i32, i32
  }
}

</mosaic_0001>

<bundles_post_ra>
// kernel: vae_forward.1
= control target key start
LH: loop header
LB: loop body
LE: loop exit
PB: predicated region body
PF: predicated region fallthrough
CT: control target
= control target key end

     0   :  { %20 = vsyncpa [#allocation3], 0  ;;  %s6768_s0 = inlined_call_operand.vmem [shape: bf16[8,896], index: 0, kind: input, shape index: {}]   ;;  %s6769_s1 = inlined_call_operand.vmem [shape: f32[8,128], index: 1, kind: input, shape index: {}]   ;;  %s6770_s2 = inlined_call_operand.hbm [shape: bf16[896,512], index: 2, kind: input, shape index: {}]   ;;  %s6771_s3 = inlined_call_operand.vmem [shape: f32[1,512], index: 3, kind: input, shape index: {}]   ;;  %s6772_s4 = inlined_call_operand.hbm [shape: bf16[512,128], index: 4, kind: input, shape index: {}]   ;;  %s6773_s5 = inlined_call_operand.vmem [shape: f32[1,128], index: 5, kind: input, shape index: {}]   ;;  %s6774_s6 = inlined_call_operand.hbm [shape: bf16[512,128], index: 6, kind: input, shape index: {}]   ;;  %s6775_s7 = inlined_call_operand.vmem [shape: f32[1,128], index: 7, kind: input, shape index: {}]   ;;  %s6776_s8 = inlined_call_operand.hbm [shape: bf16[128,512], index: 8, kind: input, shape index: {}]   ;;  %s6777_s9 = inlined_call_operand.vmem [shape: f32[1,512], index: 9, kind: input, shape index: {}]   ;;  %s6778_s10 = inlined_call_operand.hbm [shape: bf16[512,896], index: 10, kind: input, shape index: {}]   ;;  %s6779_s11 = inlined_call_operand.vmem [shape: f32[1,896], index: 11, kind: input, shape index: {}]   ;;  %s6780_s12 = inlined_call_operand.hbm [shape: f32[8,896], index: 12, kind: output, shape index: {0}]   ;;  %s6781_s13 = inlined_call_operand.hbm [shape: f32[8,128], index: 13, kind: output, shape index: {1}]   ;;  %s6782_s14 = inlined_call_operand.hbm [shape: f32[8,128], index: 14, kind: output, shape index: {2}]  }
   0x1   :  { %21 = vsyncpa [#allocation6], 0 }
   0x2   :  { %22 = vsyncpa [#allocation9], 0 }
   0x3   :  { %23 = vsyncpa [#allocation4], 0 }
   0x4   :  { %24 = vsyncpa [#allocation13], 0  ;;  %s6438_s29 = smov [#allocation5]   ;;  %s6252_s17 = scalar_lea.hbm %s6772_s4, 4096 }
   0x5   :  { %s48_s30 = sshll.u32 %s6438_s29, 4  ;;  %p6253_p0 = scmp.ne.s32.totalorder %s6772_s4, %s6252_s17  ;;  %s49_s30 = int_to_ptr.vmem [resolvable:$true] %s48_s30 }
   0x6   :  { %p6256_p1 = scmp.lt.u32.totalorder %s6252_s17, %s6772_s4 }
   0x8   :  { %p6258_p2 = pnand %p6256_p1, %p6253_p0 }
   0xa   :  { %6261 = shalt.err (!%p6258_p2)
}
   0xb   :  { %s6262_s22 = scalar_lea.vmem %s49_s30, 4096  ;;  %p6267_p4 = scmp.lt.s32.totalorder %s49_s30, %s49_s30 }
   0xc   :  { %p6263_p3 = scmp.ne.s32.totalorder %s49_s30, %s6262_s22  ;;  %p6268_p5 = scmp.lt.s32.totalorder %s6262_s22, %s6262_s22 }
   0xe   :  { %p6269_p6 = por %p6268_p5, %p6267_p4 }
  0x10   :  { %p6270_p7 = pnand %p6269_p6, %p6263_p3 }
  0x12   :  { %6273 = shalt.err (!%p6270_p7)
}
  0x13   :  { %s6439_s23 = smov 64   ;;  %s6440_s24 = smov 4  }
  0x14   :  { %54 = dma.hbm_to_vmem [thread:$0]  %s6772_s4, 4096, %s49_s30, [#allocation6], %s6439_s23, %s6439_s23, %s6440_s24  }
  0x15   :  { %s6441_s27 = smov [#allocation8]   ;;  %s6442_s29 = smov [#allocation2]  }
  0x16   :  { %s76_s28 = sshll.u32 %s6441_s27, 4  ;;  %s34_s15 = sshll.u32 %s6442_s29, 4  ;;  %s77_s28 = int_to_ptr.vmem [resolvable:$true] %s76_s28  ;;  %s35_s15 = int_to_ptr.vmem [resolvable:$true] %s34_s15 }
  0x17   :  { %s6274_s18 = scalar_lea.hbm %s6776_s8, 4096 }
  0x18   :  { %p6275_p8 = scmp.ne.s32.totalorder %s6776_s8, %s6274_s18  ;;  %p6278_p9 = scmp.lt.u32.totalorder %s6274_s18, %s6776_s8 }
  0x1a   :  { %p6280_p10 = pnand %p6278_p9, %p6275_p8 }
  0x1c   :  { %6283 = shalt.err (!%p6280_p10)
}
  0x1d   :  { %s6284_s4 = scalar_lea.vmem %s77_s28, 4096  ;;  %p6289_p12 = scmp.lt.s32.totalorder %s77_s28, %s77_s28 }
  0x1e   :  { %p6285_p11 = scmp.ne.s32.totalorder %s77_s28, %s6284_s4  ;;  %p6290_p13 = scmp.lt.s32.totalorder %s6284_s4, %s6284_s4 }
  0x20   :  { %p6291_p0 = por %p6290_p13, %p6289_p12 }
  0x22   :  { %p6292_p1 = pnand %p6291_p0, %p6285_p11 }
  0x24   :  { %6295 = shalt.err (!%p6292_p1)
}
  0x25   :  { %s6443_s30 = smov 256   ;;  %s6444_s25 = smov 16  }
  0x26   :  { %82 = dma.hbm_to_vmem [thread:$0]  %s6776_s8, 4096, %s77_s28, [#allocation9], %s6443_s30, %s6443_s30, %s6444_s25  }
  0x27   :  { %s6296_s17 = scalar_lea.hbm %s6770_s2, 28672 }
  0x28   :  { %p6297_p2 = scmp.ne.s32.totalorder %s6770_s2, %s6296_s17  ;;  %p6300_p3 = scmp.lt.u32.totalorder %s6296_s17, %s6770_s2 }
  0x2a   :  { %p6302_p4 = pnand %p6300_p3, %p6297_p2 }
  0x2c   :  { %6305 = shalt.err (!%p6302_p4)
}
  0x2d   :  { %s6306_s22 = scalar_lea.vmem %s35_s15, 28672  ;;  %p6311_p6 = scmp.lt.s32.totalorder %s35_s15, %s35_s15 }
  0x2e   :  { %p6307_p5 = scmp.ne.s32.totalorder %s35_s15, %s6306_s22  ;;  %p6312_p7 = scmp.lt.s32.totalorder %s6306_s22, %s6306_s22 }
  0x30   :  { %p6313_p8 = por %p6312_p7, %p6311_p6 }
  0x32   :  { %p6314_p9 = pnand %p6313_p8, %p6307_p5 }
  0x34   :  { %6317 = shalt.err (!%p6314_p9)
}
  0x35   :  { %40 = dma.hbm_to_vmem [thread:$0]  %s6770_s2, 28672, %s35_s15, [#allocation3], %s6443_s30, %s6443_s30, %s6444_s25  }
  0x36   :  { %s6445_s4 = smov [#allocation7]   ;;  %s6446_s27 = smov [#allocation10]  }
  0x37   :  { %s62_s26 = sshll.u32 %s6445_s4, 4  ;;  %s90_s29 = sshll.u32 %s6446_s27, 4  ;;  %s63_s26 = int_to_ptr.vmem [resolvable:$true] %s62_s26  ;;  %s91_s29 = int_to_ptr.vmem [resolvable:$true] %s90_s29 }
  0x38   :  { %s6318_s18 = scalar_lea.hbm %s6774_s6, 4096 }
  0x39   :  { %p6319_p10 = scmp.ne.s32.totalorder %s6774_s6, %s6318_s18  ;;  %p6322_p11 = scmp.lt.u32.totalorder %s6318_s18, %s6774_s6 }
  0x3b   :  { %p6324_p12 = pnand %p6322_p11, %p6319_p10 }
  0x3d   :  { %6327 = shalt.err (!%p6324_p12)
}
  0x3e   :  { %s6328_s2 = scalar_lea.vmem %s63_s26, 4096  ;;  %p6333_p0 = scmp.lt.s32.totalorder %s63_s26, %s63_s26 }
  0x3f   :  { %p6329_p13 = scmp.ne.s32.totalorder %s63_s26, %s6328_s2  ;;  %p6334_p1 = scmp.lt.s32.totalorder %s6328_s2, %s6328_s2 }
  0x41   :  { %p6335_p2 = por %p6334_p1, %p6333_p0 }
  0x43   :  { %p6336_p3 = pnand %p6335_p2, %p6329_p13 }
  0x45   :  { %6339 = shalt.err (!%p6336_p3)
}
  0x46   :  { %68 = dma.hbm_to_vmem [thread:$0]  %s6774_s6, 4096, %s63_s26, [#allocation6], %s6439_s23, %s6439_s23, %s6440_s24  }
  0x47   :  { %s6340_s28 = scalar_lea.hbm %s6778_s10, 28672 }
  0x48   :  { %p6341_p4 = scmp.ne.s32.totalorder %s6778_s10, %s6340_s28  ;;  %p6344_p5 = scmp.lt.u32.totalorder %s6340_s28, %s6778_s10 }
  0x4a   :  { %p6346_p6 = pnand %p6344_p5, %p6341_p4 }
  0x4c   :  { %6349 = shalt.err (!%p6346_p6)
}
  0x4d   :  { %s6350_s18 = scalar_lea.vmem %s91_s29, 28672  ;;  %p6355_p8 = scmp.lt.s32.totalorder %s91_s29, %s91_s29 }
  0x4e   :  { %p6351_p7 = scmp.ne.s32.totalorder %s91_s29, %s6350_s18  ;;  %p6356_p9 = scmp.lt.s32.totalorder %s6350_s18, %s6350_s18 }
  0x50   :  { %p6357_p10 = por %p6356_p9, %p6355_p8 }
  0x52   :  { %p6358_p11 = pnand %p6357_p10, %p6351_p7 }
  0x54   :  { %6361 = shalt.err (!%p6358_p11)
}
  0x55   :  { %s6447_s6 = smov 448   ;;  %s6448_s23 = smov 28  }
  0x56   :  { %96 = dma.hbm_to_vmem [thread:$0]  %s6778_s10, 28672, %s91_s29, [#allocation9], %s6447_s6, %s6447_s6, %s6448_s23  }
  0x57   :  { %6428 = dma.done.wait [#allocation3], 28672  }
  0x58   :  { %6429 = vsyncadd [#allocation3], 4294938624 }
  0x59   :  { %6430 = dma.done.wait [#allocation6], 8192  }
  0x5a   :  { %6431 = vsyncadd [#allocation6], 4294959104 }
  0x5b   :  { %6432 = dma.done.wait [#allocation9], 32768  }
  0x5c   :  { %6433 = vsyncadd [#allocation9], 4294934528  ;;  %v6449_v0 = vmov 0   ;;  %v5446_v1 = vld [vmem:[#allocation2 + $0x4] ss:$16 sps:$4 sm:$0xff]  }
  0x5d   :  { %1666 = vmatprep.mubr.bf16.mxu1 %v6449_v0  ;;  %v5448_v2 = vld [vmem:[#allocation2 + $0x604] ss:$16 sps:$4 sm:$0xff]   ;;  %1511 = vmatprep.subr.bf16.mxu0 %v5446_v1  ;;  %v5450_v3 = vld [vmem:[#allocation2] ss:$16 sps:$4 sm:$0xff]   ;;  %v5499_v34 = vld [vmem:[#allocation2 + $0xc] ss:$16 sps:$4 sm:$0xff]  }
  0x5e   :  { %v5451_v4 = vld [vmem:[#allocation2 + $0x600] ss:$16 sps:$4 sm:$0xff]   ;;  %1634 = vmatprep.subr.bf16.mxu1 %v5448_v2  ;;  %v5452_v5 = vld [vmem:[#allocation2 + $0x24] ss:$16 sps:$4 sm:$0xff]   ;;  %1512 = vmatpush1.bf16.msra.mxu0 %v5450_v3  ;;  %v5496_v35 = vld [vmem:[%s6768_s0 + $0x18] ss:$0 sps:$4 sm:$0xff]  }
  0x5f   :  { %1635 = vmatpush1.bf16.msra.mxu1 %v5451_v4  ;;  %v5454_v6 = vld [vmem:[#allocation2 + $0x624] ss:$16 sps:$4 sm:$0xff]   ;;  %v5456_v7 = vld [vmem:[#allocation2 + $0x20] ss:$16 sps:$4 sm:$0xff]   ;;  %1513 = vmatprep.subr.bf16.mxu0 %v5452_v5  ;;  %v5497_v36 = vld [vmem:[#allocation2 + $0x8] ss:$16 sps:$4 sm:$0xff]  }
  0x60   :  { %v5457_v8 = vld [vmem:[#allocation2 + $0x620] ss:$16 sps:$4 sm:$0xff]   ;;  %1636 = vmatprep.subr.bf16.mxu1 %v5454_v6  ;;  %v5458_v9 = vld [vmem:[#allocation2 + $0x44] ss:$16 sps:$4 sm:$0xff]   ;;  %v5505_v39 = vld [vmem:[#allocation2 + $0x2c] ss:$16 sps:$4 sm:$0xff]  }
  0x61   :  { %v5460_v10 = vld [vmem:[#allocation2 + $0x644] ss:$16 sps:$4 sm:$0xff]   ;;  %v5462_v11 = vld [vmem:[#allocation2 + $0x40] ss:$16 sps:$4 sm:$0xff]   ;;  %v5503_v40 = vld [vmem:[#allocation2 + $0x28] ss:$16 sps:$4 sm:$0xff]  }
  0x62   :  { %v5463_v12 = vld [vmem:[#allocation2 + $0x640] ss:$16 sps:$4 sm:$0xff]   ;;  %1514 = vmatpush1.bf16.msra.mxu0 %v5456_v7  ;;  %v5464_v13 = vld [vmem:[#allocation2 + $0x64] ss:$16 sps:$4 sm:$0xff]   ;;  %v5511_v43 = vld [vmem:[#allocation2 + $0x4c] ss:$16 sps:$4 sm:$0xff]  }
  0x63   :  { %1637 = vmatpush1.bf16.msra.mxu1 %v5457_v8  ;;  %1515 = vmatprep.subr.bf16.mxu0 %v5458_v9  ;;  %v5466_v14 = vld [vmem:[#allocation2 + $0x664] ss:$16 sps:$4 sm:$0xff]   ;;  %v5468_v15 = vld [vmem:[#allocation2 + $0x60] ss:$16 sps:$4 sm:$0xff]   ;;  %v5509_v44 = vld [vmem:[#allocation2 + $0x48] ss:$16 sps:$4 sm:$0xff]  }
  0x64   :  { %1638 = vmatprep.subr.bf16.mxu1 %v5460_v10  ;;  %v5469_v16 = vld [vmem:[#allocation2 + $0x660] ss:$16 sps:$4 sm:$0xff]   ;;  %v5470_v17 = vld [vmem:[#allocation2 + $0x84] ss:$16 sps:$4 sm:$0xff]   ;;  %v5517_v47 = vld [vmem:[#allocation2 + $0x6c] ss:$16 sps:$4 sm:$0xff]  }
  0x65   :  { %v5472_v18 = vld [vmem:[#allocation2 + $0x684] ss:$16 sps:$4 sm:$0xff]   ;;  %v5474_v19 = vld [vmem:[#allocation2 + $0x80] ss:$16 sps:$4 sm:$0xff]   ;;  %v5515_v48 = vld [vmem:[#allocation2 + $0x68] ss:$16 sps:$4 sm:$0xff]  }
  0x66   :  { %1516 = vmatpush1.bf16.msra.mxu0 %v5462_v11  ;;  %v5475_v20 = vld [vmem:[#allocation2 + $0x680] ss:$16 sps:$4 sm:$0xff]   ;;  %v5476_v21 = vld [vmem:[#allocation2 + $0xa4] ss:$16 sps:$4 sm:$0xff]   ;;  %v5523_v53 = vld [vmem:[#allocation2 + $0x8c] ss:$16 sps:$4 sm:$0xff]  }
  0x67   :  { %1639 = vmatpush1.bf16.msra.mxu1 %v5463_v12  ;;  %1517 = vmatprep.subr.bf16.mxu0 %v5464_v13  ;;  %v5478_v22 = vld [vmem:[#allocation2 + $0x6a4] ss:$16 sps:$4 sm:$0xff]   ;;  %v5480_v23 = vld [vmem:[#allocation2 + $0xa0] ss:$16 sps:$4 sm:$0xff]   ;;  %v5521_v54 = vld [vmem:[#allocation2 + $0x88] ss:$16 sps:$4 sm:$0xff]  }
  0x68   :  { %1640 = vmatprep.subr.bf16.mxu1 %v5466_v14  ;;  %v5481_v24 = vld [vmem:[#allocation2 + $0x6a0] ss:$16 sps:$4 sm:$0xff]   ;;  %v5482_v25 = vld [vmem:[#allocation2 + $0xc4] ss:$16 sps:$4 sm:$0xff]   ;;  %v5529_v57 = vld [vmem:[#allocation2 + $0xac] ss:$16 sps:$4 sm:$0xff]  }
  0x69   :  { %v5484_v26 = vld [vmem:[#allocation2 + $0x6c4] ss:$16 sps:$4 sm:$0xff]   ;;  %v5486_v27 = vld [vmem:[#allocation2 + $0xc0] ss:$16 sps:$4 sm:$0xff]   ;;  %v5527_v58 = vld [vmem:[#allocation2 + $0xa8] ss:$16 sps:$4 sm:$0xff]  }
  0x6a   :  { %1518 = vmatpush1.bf16.msra.mxu0 %v5468_v15  ;;  %v5487_v28 = vld [vmem:[#allocation2 + $0x6c0] ss:$16 sps:$4 sm:$0xff]   ;;  %v5488_v29 = vld [vmem:[#allocation2 + $0xe4] ss:$16 sps:$4 sm:$0xff]   ;;  %v5535_v61 = vld [vmem:[#allocation2 + $0xcc] ss:$16 sps:$4 sm:$0xff]  }
  0x6b   :  { %1641 = vmatpush1.bf16.msra.mxu1 %v5469_v16  ;;  %1519 = vmatprep.subr.bf16.mxu0 %v5470_v17  ;;  %v5490_v30 = vld [vmem:[#allocation2 + $0x6e4] ss:$16 sps:$4 sm:$0xff]   ;;  %v5492_v31 = vld [vmem:[#allocation2 + $0xe0] ss:$16 sps:$4 sm:$0xff]   ;;  %v5533_v62 = vld [vmem:[#allocation2 + $0xc8] ss:$16 sps:$4 sm:$0xff]  }
  0x6c   :  { %1642 = vmatprep.subr.bf16.mxu1 %v5472_v18  ;;  %v5493_v32 = vld [vmem:[#allocation2 + $0x6e0] ss:$16 sps:$4 sm:$0xff]   ;;  %v5494_v33 = vld [vmem:[#allocation2 + $0x104] ss:$16 sps:$4 sm:$0xff]   ;;  %v5541_v2 = vld [vmem:[#allocation2 + $0xec] ss:$16 sps:$4 sm:$0xff]  }
  0x6d   :  { %v5500_v37 = vld [vmem:[#allocation2 + $0x100] ss:$16 sps:$4 sm:$0xff]   ;;  %v5501_v38 = vld [vmem:[#allocation2 + $0x124] ss:$16 sps:$4 sm:$0xff]   ;;  %v5539_v3 = vld [vmem:[#allocation2 + $0xe8] ss:$16 sps:$4 sm:$0xff]  }
  0x6e   :  { %1520 = vmatpush1.bf16.msra.mxu0 %v5474_v19  ;;  %v5506_v41 = vld [vmem:[#allocation2 + $0x120] ss:$16 sps:$4 sm:$0xff]   ;;  %v5507_v42 = vld [vmem:[#allocation2 + $0x144] ss:$16 sps:$4 sm:$0xff]   ;;  %v5550_v6 = vld [vmem:[#allocation2 + $0x10c] ss:$16 sps:$4 sm:$0xff]  }
  0x6f   :  { %1643 = vmatpush1.bf16.msra.mxu1 %v5475_v20  ;;  %1521 = vmatprep.subr.bf16.mxu0 %v5476_v21  ;;  %v5512_v45 = vld [vmem:[#allocation2 + $0x140] ss:$16 sps:$4 sm:$0xff]   ;;  %v5513_v46 = vld [vmem:[#allocation2 + $0x164] ss:$16 sps:$4 sm:$0xff]   ;;  %v5548_v9 = vld [vmem:[#allocation2 + $0x108] ss:$16 sps:$4 sm:$0xff]  }
  0x70   :  { %1644 = vmatprep.subr.bf16.mxu1 %v5478_v22  ;;  %v115_v49 = vld [vmem:[%s6768_s0] sm:$0xff]  ;;  %v5556_v11 = vld [vmem:[#allocation2 + $0x12c] ss:$16 sps:$4 sm:$0xff]   ;;  %v5554_v13 = vld [vmem:[#allocation2 + $0x128] ss:$16 sps:$4 sm:$0xff]  }
  0x71   :  { %v5518_v50 = vld [vmem:[#allocation2 + $0x160] ss:$16 sps:$4 sm:$0xff]   ;;  %v5519_v51 = vld [vmem:[#allocation2 + $0x184] ss:$16 sps:$4 sm:$0xff]   ;;  %v4703_v52 = vcombine.high %v115_v49, %v115_v49  ;;  %v6601_v7 = vcombine.low %v115_v49, %v115_v49  ;;  %v5562_v15 = vld [vmem:[#allocation2 + $0x14c] ss:$16 sps:$4 sm:$0xff]  }
  0x72   :  { %1522 = vmatpush1.bf16.msra.mxu0 %v5480_v23  ;;  %v5524_v55 = vld [vmem:[#allocation2 + $0x180] ss:$16 sps:$4 sm:$0xff]   ;;  %v5525_v56 = vld [vmem:[#allocation2 + $0x1a4] ss:$16 sps:$4 sm:$0xff]   ;;  %v5560_v17 = vld [vmem:[#allocation2 + $0x148] ss:$16 sps:$4 sm:$0xff]  }
  0x73   :  { %1645 = vmatpush1.bf16.msra.mxu1 %v5481_v24  ;;  %1523 = vmatprep.subr.bf16.mxu0 %v5482_v25  ;;  %v5530_v59 = vld [vmem:[#allocation2 + $0x1a0] ss:$16 sps:$4 sm:$0xff]   ;;  %v5531_v60 = vld [vmem:[#allocation2 + $0x1c4] ss:$16 sps:$4 sm:$0xff]   ;;  %v5568_v19 = vld [vmem:[#allocation2 + $0x16c] ss:$16 sps:$4 sm:$0xff]  }
  0x74   :  { %1646 = vmatprep.subr.bf16.mxu1 %v5484_v26  ;;  %1543 = vmatprep.mubr.bf16.mxu0 %v4703_v52  ;;  %v5536_v63 = vld [vmem:[#allocation2 + $0x1c0] ss:$16 sps:$4 sm:$0xff]   ;;  %v5537_v1 = vld [vmem:[#allocation2 + $0x1e4] ss:$16 sps:$4 sm:$0xff]   ;;  %v5566_v21 = vld [vmem:[#allocation2 + $0x168] ss:$16 sps:$4 sm:$0xff]  }
  0x75   :  { %v5542_v4 = vld [vmem:[#allocation2 + $0x1e0] ss:$16 sps:$4 sm:$0xff]   ;;  %v5547_v5 = vld [vmem:[#allocation2 + $0x204] ss:$16 sps:$4 sm:$0xff]   ;;  %v5574_v23 = vld [vmem:[#allocation2 + $0x18c] ss:$16 sps:$4 sm:$0xff]  }
  0x76   :  { %1524 = vmatpush1.bf16.msra.mxu0 %v5486_v27  ;;  %v5545_v8 = vld [vmem:[#allocation2 + $0x200] ss:$16 sps:$4 sm:$0xff]   ;;  %v5553_v10 = vld [vmem:[#allocation2 + $0x224] ss:$16 sps:$4 sm:$0xff]   ;;  %v5572_v25 = vld [vmem:[#allocation2 + $0x188] ss:$16 sps:$4 sm:$0xff]  }
  0x77   :  { %1647 = vmatpush1.bf16.msra.mxu1 %v5487_v28  ;;  %1525 = vmatprep.subr.bf16.mxu0 %v5488_v29  ;;  %v5551_v12 = vld [vmem:[#allocation2 + $0x220] ss:$16 sps:$4 sm:$0xff]   ;;  %v5559_v14 = vld [vmem:[#allocation2 + $0x244] ss:$16 sps:$4 sm:$0xff]   ;;  %v5580_v27 = vld [vmem:[#allocation2 + $0x1ac] ss:$16 sps:$4 sm:$0xff]  }
  0x78   :  { %1648 = vmatprep.subr.bf16.mxu1 %v5490_v30  ;;  %v5557_v16 = vld [vmem:[#allocation2 + $0x240] ss:$16 sps:$4 sm:$0xff]   ;;  %v5565_v18 = vld [vmem:[#allocation2 + $0x264] ss:$16 sps:$4 sm:$0xff]   ;;  %v5578_v29 = vld [vmem:[#allocation2 + $0x1a8] ss:$16 sps:$4 sm:$0xff]  }
  0x79   :  { %v5563_v20 = vld [vmem:[#allocation2 + $0x260] ss:$16 sps:$4 sm:$0xff]   ;;  %v5571_v22 = vld [vmem:[#allocation2 + $0x284] ss:$16 sps:$4 sm:$0xff]   ;;  %v5610_v49 = vld [vmem:[#allocation2 + $0x24c] ss:$16 sps:$4 sm:$0xff]  }
  0x7a   :  { %1526 = vmatpush1.bf16.msra.mxu0 %v5492_v31  ;;  %v5569_v24 = vld [vmem:[#allocation2 + $0x280] ss:$16 sps:$4 sm:$0xff]   ;;  %v5577_v26 = vld [vmem:[#allocation2 + $0x2a4] ss:$16 sps:$4 sm:$0xff]   ;;  %v5586_v31 = vld [vmem:[#allocation2 + $0x1cc] ss:$16 sps:$4 sm:$0xff]  }
  0x7b   :  { %1649 = vmatpush1.bf16.msra.mxu1 %v5493_v32  ;;  %1527 = vmatprep.subr.bf16.mxu0 %v5494_v33  ;;  %v5575_v28 = vld [vmem:[#allocation2 + $0x2a0] ss:$16 sps:$4 sm:$0xff]   ;;  %v5583_v30 = vld [vmem:[#allocation2 + $0x2c4] ss:$16 sps:$4 sm:$0xff]   ;;  %v6607_v32 = vld [vmem:[%s6768_s0 + $0x8] sm:$0xff] }
  0x7c   :  { %1675 = vmatprep.subr.bf16.mxu1 %v5499_v34  ;;  %v5581_v33 = vld [vmem:[#allocation2 + $0x2c0] ss:$16 sps:$4 sm:$0xff]   ;;  %v5584_v34 = vld [vmem:[#allocation2 + $0x1c8] ss:$16 sps:$4 sm:$0xff]  }
  0x7e   :  { %1667 = vmatmul.mubr.bf16.vlgmr.msra.gmra.mrb[0].mxu1 %v5496_v35  ;;  %1528 = vmatpush1.bf16.msra.mxu0 %v5500_v37  ;;  %v4705_v35 = vcombine.high %v6607_v32, %v6607_v32  ;;  %v5592_v37 = vld [vmem:[#allocation2 + $0x1ec] ss:$16 sps:$4 sm:$0xff]  }
  0x7f   :  { %1676 = vmatpush1.bf16.msra.mxu1 %v5497_v36  ;;  %1529 = vmatprep.subr.bf16.mxu0 %v5501_v38  ;;  %v5589_v36 = vld [vmem:[#allocation2 + $0x2e4] ss:$16 sps:$4 sm:$0xff]   ;;  %v5587_v38 = vld [vmem:[#allocation2 + $0x2e0] ss:$16 sps:$4 sm:$0xff]  }
  0x80   :  { %1677 = vmatprep.subr.bf16.mxu1 %v5505_v39  ;;  %1707 = vmatprep.mubr.bf16.mxu1 %v4703_v52  ;;  %v5590_v39 = vld [vmem:[#allocation2 + $0x1e8] ss:$16 sps:$4 sm:$0xff]   ;;  %v5613_v52 = vld [vmem:[#allocation2 + $0x364] ss:$16 sps:$4 sm:$0xff]  }
  0x82   :  { %1530 = vmatpush1.bf16.msra.mxu0 %v5506_v41  ;;  %v5598_v41 = vld [vmem:[#allocation2 + $0x20c] ss:$16 sps:$4 sm:$0xff]  }
  0x83   :  { %1678 = vmatpush1.bf16.msra.mxu1 %v5503_v40  ;;  %1531 = vmatprep.subr.bf16.mxu0 %v5507_v42  ;;  %v5595_v40 = vld [vmem:[#allocation2 + $0x304] ss:$16 sps:$4 sm:$0xff]   ;;  %v5593_v42 = vld [vmem:[#allocation2 + $0x300] ss:$16 sps:$4 sm:$0xff]  }
  0x84   :  { %1679 = vmatprep.subr.bf16.mxu1 %v5511_v43  ;;  %v5596_v43 = vld [vmem:[#allocation2 + $0x208] ss:$16 sps:$4 sm:$0xff]  }
  0x86   :  { %1532 = vmatpush1.bf16.msra.mxu0 %v5512_v45  ;;  %v5604_v45 = vld [vmem:[#allocation2 + $0x22c] ss:$16 sps:$4 sm:$0xff]  }
  0x87   :  { %1680 = vmatpush1.bf16.msra.mxu1 %v5509_v44  ;;  %1533 = vmatprep.subr.bf16.mxu0 %v5513_v46  ;;  %v5601_v44 = vld [vmem:[#allocation2 + $0x324] ss:$16 sps:$4 sm:$0xff]   ;;  %v5599_v46 = vld [vmem:[#allocation2 + $0x320] ss:$16 sps:$4 sm:$0xff]  }
  0x88   :  { %1681 = vmatprep.subr.bf16.mxu1 %v5517_v47  ;;  %v5602_v47 = vld [vmem:[#allocation2 + $0x228] ss:$16 sps:$4 sm:$0xff]  }
  0x8a   :  { %1534 = vmatpush1.bf16.msra.mxu0 %v5518_v50  ;;  %v5605_v50 = vld [vmem:[#allocation2 + $0x340] ss:$16 sps:$4 sm:$0xff]  }
  0x8b   :  { %1682 = vmatpush1.bf16.msra.mxu1 %v5515_v48  ;;  %1535 = vmatprep.subr.bf16.mxu0 %v5519_v51  ;;  %v5607_v48 = vld [vmem:[#allocation2 + $0x344] ss:$16 sps:$4 sm:$0xff]   ;;  %v5608_v51 = vld [vmem:[#allocation2 + $0x248] ss:$16 sps:$4 sm:$0xff]  }
  0x8c   :  { %1683 = vmatprep.subr.bf16.mxu1 %v5523_v53  ;;  %v5616_v53 = vld [vmem:[#allocation2 + $0x26c] ss:$16 sps:$4 sm:$0xff]  }
  0x8e   :  { %1536 = vmatpush1.bf16.msra.mxu0 %v5524_v55  ;;  %v5614_v55 = vld [vmem:[#allocation2 + $0x268] ss:$16 sps:$4 sm:$0xff]  }
  0x8f   :  { %1684 = vmatpush1.bf16.msra.mxu1 %v5521_v54  ;;  %1537 = vmatprep.subr.bf16.mxu0 %v5525_v56  ;;  %v5611_v54 = vld [vmem:[#allocation2 + $0x360] ss:$16 sps:$4 sm:$0xff]   ;;  %v5619_v56 = vld [vmem:[#allocation2 + $0x384] ss:$16 sps:$4 sm:$0xff]  }
  0x90   :  { %1685 = vmatprep.subr.bf16.mxu1 %v5529_v57  ;;  %v5622_v57 = vld [vmem:[#allocation2 + $0x28c] ss:$16 sps:$4 sm:$0xff]  }
  0x92   :  { %1538 = vmatpush1.bf16.msra.mxu0 %v5530_v59  ;;  %v5620_v59 = vld [vmem:[#allocation2 + $0x288] ss:$16 sps:$4 sm:$0xff]  }
  0x93   :  { %1686 = vmatpush1.bf16.msra.mxu1 %v5527_v58  ;;  %1539 = vmatprep.subr.bf16.mxu0 %v5531_v60  ;;  %v5617_v58 = vld [vmem:[#allocation2 + $0x380] ss:$16 sps:$4 sm:$0xff]   ;;  %v5625_v60 = vld [vmem:[#allocation2 + $0x3a4] ss:$16 sps:$4 sm:$0xff]  }
  0x94   :  { %1687 = vmatprep.subr.bf16.mxu1 %v5535_v61  ;;  %v5628_v61 = vld [vmem:[#allocation2 + $0x2ac] ss:$16 sps:$4 sm:$0xff]  }
  0x96   :  { %1540 = vmatpush1.bf16.msra.mxu0 %v5536_v63  ;;  %v5626_v63 = vld [vmem:[#allocation2 + $0x2a8] ss:$16 sps:$4 sm:$0xff]  }
  0x97   :  { %1688 = vmatpush1.bf16.msra.mxu1 %v5533_v62  ;;  %1541 = vmatprep.subr.bf16.mxu0 %v5537_v1  ;;  %v5623_v62 = vld [vmem:[#allocation2 + $0x3a0] ss:$16 sps:$4 sm:$0xff]   ;;  %v5631_v1 = vld [vmem:[#allocation2 + $0x3c4] ss:$16 sps:$4 sm:$0xff]  }
  0x98   :  { %1689 = vmatprep.subr.bf16.mxu1 %v5541_v2  ;;  %v5634_v2 = vld [vmem:[#allocation2 + $0x2cc] ss:$16 sps:$4 sm:$0xff]  }
  0x9a   :  { %1542 = vmatpush1.bf16.msra.mxu0 %v5542_v4  ;;  %v5632_v4 = vld [vmem:[#allocation2 + $0x2c8] ss:$16 sps:$4 sm:$0xff]  }
  0x9b   :  { %1690 = vmatpush1.bf16.msra.mxu1 %v5539_v3  ;;  %1552 = vmatprep.subr.bf16.mxu0 %v5547_v5  ;;  %v5629_v3 = vld [vmem:[#allocation2 + $0x3c0] ss:$16 sps:$4 sm:$0xff]   ;;  %v5637_v5 = vld [vmem:[#allocation2 + $0x3e4] ss:$16 sps:$4 sm:$0xff]  }
  0x9c   :  { %1691 = vmatprep.subr.bf16.mxu1 %v5550_v6  ;;  %v5640_v6 = vld [vmem:[#allocation2 + $0x2ec] ss:$16 sps:$4 sm:$0xff]  }
  0x9d   :  { %1544 = vmatmul.mubr.bf16.vlgmr.msra.gmra.mrb[0].mxu0 %v6601_v7 }
  0x9e   :  { %1553 = vmatpush1.bf16.msra.mxu0 %v5545_v8  ;;  %1584 = vmatprep.mubr.bf16.mxu0 %v4705_v35  ;;  %v5638_v8 = vld [vmem:[#allocation2 + $0x2e8] ss:$16 sps:$4 sm:$0xff]  }
  0x9f   :  { %1692 = vmatpush1.bf16.msra.mxu1 %v5548_v9  ;;  %1554 = vmatprep.subr.bf16.mxu0 %v5553_v10  ;;  %v5645_v9 = vld [vmem:[#allocation2 + $0x404] ss:$16 sps:$4 sm:$0xff]   ;;  %v5648_v10 = vld [vmem:[#allocation2 + $0x30c] ss:$16 sps:$4 sm:$0xff]  }
  0xa0   :  { %1693 = vmatprep.subr.bf16.mxu1 %v5556_v11  ;;  %v6614_v11 = vcombine.low %v6607_v32, %v6607_v32  ;;  %v5675_v32 = vld [vmem:[#allocation2 + $0x4a4] ss:$16 sps:$4 sm:$0xff]  }
  0xa2   :  { %1555 = vmatpush1.bf16.msra.mxu0 %v5551_v12  ;;  %v5643_v12 = vld [vmem:[#allocation2 + $0x400] ss:$16 sps:$4 sm:$0xff]  }
  0xa3   :  { %1694 = vmatpush1.bf16.msra.mxu1 %v5554_v13  ;;  %1556 = vmatprep.subr.bf16.mxu0 %v5559_v14  ;;  %v5646_v13 = vld [vmem:[#allocation2 + $0x308] ss:$16 sps:$4 sm:$0xff]   ;;  %v5651_v14 = vld [vmem:[#allocation2 + $0x424] ss:$16 sps:$4 sm:$0xff]  }
  0xa4   :  { %1695 = vmatprep.subr.bf16.mxu1 %v5562_v15  ;;  %v5654_v15 = vld [vmem:[#allocation2 + $0x32c] ss:$16 sps:$4 sm:$0xff]  }
  0xa6   :  { %1557 = vmatpush1.bf16.msra.mxu0 %v5557_v16  ;;  %v6619_v16 = vld [vmem:[%s6768_s0 + $0x10] sm:$0xff] }
  0xa7   :  { %1696 = vmatpush1.bf16.msra.mxu1 %v5560_v17  ;;  %1558 = vmatprep.subr.bf16.mxu0 %v5565_v18  ;;  %v6623_v17 = vcombine.high %v6619_v16, %v6619_v16  ;;  %v5649_v18 = vld [vmem:[#allocation2 + $0x420] ss:$16 sps:$4 sm:$0xff]  }
  0xa8   :  { %1697 = vmatprep.subr.bf16.mxu1 %v5568_v19  ;;  %v5652_v19 = vld [vmem:[#allocation2 + $0x328] ss:$16 sps:$4 sm:$0xff]  }
  0xaa   :  { %1559 = vmatpush1.bf16.msra.mxu0 %v5563_v20  ;;  %v5657_v20 = vld [vmem:[#allocation2 + $0x444] ss:$16 sps:$4 sm:$0xff]  }
  0xab   :  { %1698 = vmatpush1.bf16.msra.mxu1 %v5566_v21  ;;  %1560 = vmatprep.subr.bf16.mxu0 %v5571_v22  ;;  %v5660_v21 = vld [vmem:[#allocation2 + $0x34c] ss:$16 sps:$4 sm:$0xff]   ;;  %v5655_v22 = vld [vmem:[#allocation2 + $0x440] ss:$16 sps:$4 sm:$0xff]  }
  0xac   :  { %1699 = vmatprep.subr.bf16.mxu1 %v5574_v23  ;;  %v5658_v23 = vld [vmem:[#allocation2 + $0x348] ss:$16 sps:$4 sm:$0xff]  }
  0xae   :  { %1561 = vmatpush1.bf16.msra.mxu0 %v5569_v24  ;;  %v5663_v24 = vld [vmem:[#allocation2 + $0x464] ss:$16 sps:$4 sm:$0xff]  }
  0xaf   :  { %1700 = vmatpush1.bf16.msra.mxu1 %v5572_v25  ;;  %1562 = vmatprep.subr.bf16.mxu0 %v5577_v26  ;;  %v5666_v25 = vld [vmem:[#allocation2 + $0x36c] ss:$16 sps:$4 sm:$0xff]   ;;  %v5661_v26 = vld [vmem:[#allocation2 + $0x460] ss:$16 sps:$4 sm:$0xff]  }
  0xb0   :  { %1701 = vmatprep.subr.bf16.mxu1 %v5580_v27  ;;  %v5664_v27 = vld [vmem:[#allocation2 + $0x368] ss:$16 sps:$4 sm:$0xff]  }
  0xb2   :  { %1563 = vmatpush1.bf16.msra.mxu0 %v5575_v28  ;;  %v5669_v28 = vld [vmem:[#allocation2 + $0x484] ss:$16 sps:$4 sm:$0xff]  }
  0xb3   :  { %1702 = vmatpush1.bf16.msra.mxu1 %v5578_v29  ;;  %1564 = vmatprep.subr.bf16.mxu0 %v5583_v30  ;;  %v5672_v29 = vld [vmem:[#allocation2 + $0x38c] ss:$16 sps:$4 sm:$0xff]   ;;  %v5667_v30 = vld [vmem:[#allocation2 + $0x480] ss:$16 sps:$4 sm:$0xff]  }
  0xb4   :  { %1703 = vmatprep.subr.bf16.mxu1 %v5586_v31  ;;  %v5670_v31 = vld [vmem:[#allocation2 + $0x388] ss:$16 sps:$4 sm:$0xff]  }
  0xb6   :  { %1565 = vmatpush1.bf16.msra.mxu0 %v5581_v33  ;;  %v5678_v33 = vld [vmem:[#allocation2 + $0x3ac] ss:$16 sps:$4 sm:$0xff]  }
  0xb7   :  { %1704 = vmatpush1.bf16.msra.mxu1 %v5584_v34  ;;  %1566 = vmatprep.subr.bf16.mxu0 %v5589_v36  ;;  %v5673_v34 = vld [vmem:[#allocation2 + $0x4a0] ss:$16 sps:$4 sm:$0xff]   ;;  %v5681_v36 = vld [vmem:[#allocation2 + $0x4c4] ss:$16 sps:$4 sm:$0xff]  }
  0xb8   :  { %1705 = vmatprep.subr.bf16.mxu1 %v5592_v37  ;;  %v5684_v37 = vld [vmem:[#allocation2 + $0x3cc] ss:$16 sps:$4 sm:$0xff]  }
  0xba   :  { %1567 = vmatpush1.bf16.msra.mxu0 %v5587_v38  ;;  %v5679_v38 = vld [vmem:[#allocation2 + $0x4c0] ss:$16 sps:$4 sm:$0xff]  }
  0xbb   :  { %1706 = vmatpush1.bf16.msra.mxu1 %v5590_v39  ;;  %1568 = vmatprep.subr.bf16.mxu0 %v5595_v40  ;;  %v5682_v39 = vld [vmem:[#allocation2 + $0x3c8] ss:$16 sps:$4 sm:$0xff]   ;;  %v5687_v40 = vld [vmem:[#allocation2 + $0x4e4] ss:$16 sps:$4 sm:$0xff]  }
  0xbc   :  { %1716 = vmatprep.subr.bf16.mxu1 %v5598_v41  ;;  %v5690_v41 = vld [vmem:[#allocation2 + $0x3ec] ss:$16 sps:$4 sm:$0xff]  }
  0xbe   :  { %1708 = vmatmul.mubr.bf16.vlgmr.msra.gmra.mrb[4].mxu1 %v6601_v7  ;;  %1569 = vmatpush1.bf16.msra.mxu0 %v5593_v42  ;;  %v5635_v7 = vld [vmem:[#allocation2 + $0x3e0] ss:$16 sps:$4 sm:$0xff]  }
  0xbf   :  { %1717 = vmatpush1.bf16.msra.mxu1 %v5596_v43  ;;  %1570 = vmatprep.subr.bf16.mxu0 %v5601_v44  ;;  %v5685_v42 = vld [vmem:[#allocation2 + $0x4e0] ss:$16 sps:$4 sm:$0xff]   ;;  %v5688_v43 = vld [vmem:[#allocation2 + $0x3e8] ss:$16 sps:$4 sm:$0xff]   ;;  %v5693_v44 = vld [vmem:[#allocation2 + $0x504] ss:$16 sps:$4 sm:$0xff]  }
  0xc0   :  { %1718 = vmatprep.subr.bf16.mxu1 %v5604_v45  ;;  %1748 = vmatprep.mubr.bf16.mxu1 %v4705_v35  ;;  %v5676_v35 = vld [vmem:[#allocation2 + $0x3a8] ss:$16 sps:$4 sm:$0xff]   ;;  %v5696_v45 = vld [vmem:[#allocation2 + $0x40c] ss:$16 sps:$4 sm:$0xff]  }
  0xc2   :  { %1571 = vmatpush1.bf16.msra.mxu0 %v5599_v46  ;;  %v5691_v46 = vld [vmem:[#allocation2 + $0x500] ss:$16 sps:$4 sm:$0xff]  }
  0xc3   :  { %1719 = vmatpush1.bf16.msra.mxu1 %v5602_v47  ;;  %1572 = vmatprep.subr.bf16.mxu0 %v5607_v48  ;;  %v5694_v47 = vld [vmem:[#allocation2 + $0x408] ss:$16 sps:$4 sm:$0xff]   ;;  %v5699_v48 = vld [vmem:[#allocation2 + $0x524] ss:$16 sps:$4 sm:$0xff]  }
  0xc4   :  { %1720 = vmatprep.subr.bf16.mxu1 %v5610_v49  ;;  %v5702_v49 = vld [vmem:[#allocation2 + $0x42c] ss:$16 sps:$4 sm:$0xff]  }
  0xc6   :  { %1573 = vmatpush1.bf16.msra.mxu0 %v5605_v50  ;;  %v5697_v50 = vld [vmem:[#allocation2 + $0x520] ss:$16 sps:$4 sm:$0xff]  }
  0xc7   :  { %1721 = vmatpush1.bf16.msra.mxu1 %v5608_v51  ;;  %1574 = vmatprep.subr.bf16.mxu0 %v5613_v52  ;;  %v5700_v51 = vld [vmem:[#allocation2 + $0x428] ss:$16 sps:$4 sm:$0xff]   ;;  %v5705_v52 = vld [vmem:[#allocation2 + $0x544] ss:$16 sps:$4 sm:$0xff]  }
  0xc8   :  { %1722 = vmatprep.subr.bf16.mxu1 %v5616_v53  ;;  %v5708_v53 = vld [vmem:[#allocation2 + $0x44c] ss:$16 sps:$4 sm:$0xff]  }
  0xca   :  { %1575 = vmatpush1.bf16.msra.mxu0 %v5611_v54  ;;  %v5703_v54 = vld [vmem:[#allocation2 + $0x540] ss:$16 sps:$4 sm:$0xff]  }
  0xcb   :  { %1723 = vmatpush1.bf16.msra.mxu1 %v5614_v55  ;;  %1576 = vmatprep.subr.bf16.mxu0 %v5619_v56  ;;  %v5706_v55 = vld [vmem:[#allocation2 + $0x448] ss:$16 sps:$4 sm:$0xff]   ;;  %v5711_v56 = vld [vmem:[#allocation2 + $0x564] ss:$16 sps:$4 sm:$0xff]  }
  0xcc   :  { %1724 = vmatprep.subr.bf16.mxu1 %v5622_v57  ;;  %v5714_v57 = vld [vmem:[#allocation2 + $0x46c] ss:$16 sps:$4 sm:$0xff]  }
  0xce   :  { %1577 = vmatpush1.bf16.msra.mxu0 %v5617_v58  ;;  %v5709_v58 = vld [vmem:[#allocation2 + $0x560] ss:$16 sps:$4 sm:$0xff]  }
  0xcf   :  { %1725 = vmatpush1.bf16.msra.mxu1 %v5620_v59  ;;  %1578 = vmatprep.subr.bf16.mxu0 %v5625_v60  ;;  %v5712_v59 = vld [vmem:[#allocation2 + $0x468] ss:$16 sps:$4 sm:$0xff]   ;;  %v5717_v60 = vld [vmem:[#allocation2 + $0x584] ss:$16 sps:$4 sm:$0xff]  }
  0xd0   :  { %1726 = vmatprep.subr.bf16.mxu1 %v5628_v61  ;;  %v5720_v61 = vld [vmem:[#allocation2 + $0x48c] ss:$16 sps:$4 sm:$0xff]  }
  0xd2   :  { %1579 = vmatpush1.bf16.msra.mxu0 %v5623_v62  ;;  %v5715_v62 = vld [vmem:[#allocation2 + $0x580] ss:$16 sps:$4 sm:$0xff]  }
  0xd3   :  { %1727 = vmatpush1.bf16.msra.mxu1 %v5626_v63  ;;  %1580 = vmatprep.subr.bf16.mxu0 %v5631_v1  ;;  %v5718_v63 = vld [vmem:[#allocation2 + $0x488] ss:$16 sps:$4 sm:$0xff]   ;;  %v5723_v1 = vld [vmem:[#allocation2 + $0x5a4] ss:$16 sps:$4 sm:$0xff]  }
  0xd4   :  { %1728 = vmatprep.subr.bf16.mxu1 %v5634_v2  ;;  %v5726_v2 = vld [vmem:[#allocation2 + $0x4ac] ss:$16 sps:$4 sm:$0xff]  }
  0xd6   :  { %1581 = vmatpush1.bf16.msra.mxu0 %v5629_v3  ;;  %v5721_v3 = vld [vmem:[#allocation2 + $0x5a0] ss:$16 sps:$4 sm:$0xff]  }
  0xd7   :  { %1729 = vmatpush1.bf16.msra.mxu1 %v5632_v4  ;;  %1582 = vmatprep.subr.bf16.mxu0 %v5637_v5  ;;  %v5724_v4 = vld [vmem:[#allocation2 + $0x4a8] ss:$16 sps:$4 sm:$0xff]   ;;  %v5729_v5 = vld [vmem:[#allocation2 + $0x5c4] ss:$16 sps:$4 sm:$0xff]  }
  0xd8   :  { %1730 = vmatprep.subr.bf16.mxu1 %v5640_v6  ;;  %v5732_v6 = vld [vmem:[#allocation2 + $0x4cc] ss:$16 sps:$4 sm:$0xff]  }
  0xda   :  { %1583 = vmatpush1.bf16.msra.mxu0 %v5635_v7  ;;  %v5727_v7 = vld [vmem:[#allocation2 + $0x5c0] ss:$16 sps:$4 sm:$0xff]  }
  0xdb   :  { %1731 = vmatpush1.bf16.msra.mxu1 %v5638_v8  ;;  %1593 = vmatprep.subr.bf16.mxu0 %v5645_v9  ;;  %v5730_v8 = vld [vmem:[#allocation2 + $0x4c8] ss:$16 sps:$4 sm:$0xff]   ;;  %v5735_v9 = vld [vmem:[#allocation2 + $0x5e4] ss:$16 sps:$4 sm:$0xff]  }
  0xdc   :  { %1732 = vmatprep.subr.bf16.mxu1 %v5648_v10  ;;  %v5738_v10 = vld [vmem:[#allocation2 + $0x4ec] ss:$16 sps:$4 sm:$0xff]  }
  0xdd   :  { %1585 = vmatmul.mubr.bf16.vlgmr.msra.gmra.mrb[0].mxu0 %v6614_v11 }
  0xde   :  { %1594 = vmatpush1.bf16.msra.mxu0 %v5643_v12  ;;  %1625 = vmatprep.mubr.bf16.mxu0 %v6623_v17  ;;  %v5736_v12 = vld [vmem:[#allocation2 + $0x4e8] ss:$16 sps:$4 sm:$0xff]  }
  0xdf   :  { %1733 = vmatpush1.bf16.msra.mxu1 %v5646_v13  ;;  %1595 = vmatprep.subr.bf16.mxu0 %v5651_v14  ;;  %v5743_v13 = vld [vmem:[#allocation2 + $0x50c] ss:$16 sps:$4 sm:$0xff]   ;;  %v5789_v14 = vld [vmem:[#allocation5 + $0x40] sm:$0xff]  }
  0xe0   :  { %1734 = vmatprep.subr.bf16.mxu1 %v5654_v15  ;;  %v5741_v15 = vld [vmem:[#allocation2 + $0x508] ss:$16 sps:$4 sm:$0xff]  }
  0xe2   :  { %1596 = vmatpush1.bf16.msra.mxu0 %v5649_v18  ;;  %v4706_v18 = vcombine.low %v6619_v16, %v6619_v16  ;;  %v5750_v16 = vld [vmem:[#allocation2 + $0x568] ss:$16 sps:$4 sm:$0xff]  }
  0xe3   :  { %1735 = vmatpush1.bf16.msra.mxu1 %v5652_v19  ;;  %1597 = vmatprep.subr.bf16.mxu0 %v5657_v20  ;;  %v5746_v19 = vld [vmem:[#allocation2 + $0x52c] ss:$16 sps:$4 sm:$0xff]  }
  0xe4   :  { %1736 = vmatprep.subr.bf16.mxu1 %v5660_v21  ;;  %v5791_v20 = vld [vmem:[#allocation5 + $0x48] sm:$0xff]  }
  0xe5   :  { %v5744_v21 = vld [vmem:[#allocation2 + $0x528] ss:$16 sps:$4 sm:$0xff]  }
  0xe6   :  { %1598 = vmatpush1.bf16.msra.mxu0 %v5655_v22  ;;  %v5792_v22 = vld [vmem:[#allocation5 + $0x8] sm:$0xff]  }
  0xe7   :  { %1737 = vmatpush1.bf16.msra.mxu1 %v5658_v23  ;;  %1599 = vmatprep.subr.bf16.mxu0 %v5663_v24  ;;  %v5749_v23 = vld [vmem:[#allocation2 + $0x54c] ss:$16 sps:$4 sm:$0xff]   ;;  %v5793_v24 = vld [vmem:[#allocation5 + $0x50] sm:$0xff]  }
  0xe8   :  { %1738 = vmatprep.subr.bf16.mxu1 %v5666_v25  ;;  %v5747_v25 = vld [vmem:[#allocation2 + $0x548] ss:$16 sps:$4 sm:$0xff]  }
  0xea   :  { %1600 = vmatpush1.bf16.msra.mxu0 %v5661_v26  ;;  %v5794_v26 = vld [vmem:[#allocation5 + $0x10] sm:$0xff]  }
  0xeb   :  { %1739 = vmatpush1.bf16.msra.mxu1 %v5664_v27  ;;  %1601 = vmatprep.subr.bf16.mxu0 %v5669_v28  ;;  %v5752_v27 = vld [vmem:[#allocation2 + $0x56c] ss:$16 sps:$4 sm:$0xff]  }
  0xec   :  { %1740 = vmatprep.subr.bf16.mxu1 %v5672_v29  ;;  %v5795_v28 = vld [vmem:[#allocation5 + $0x58] sm:$0xff]  }
  0xed   :  { %v5796_v29 = vld [vmem:[#allocation5 + $0x18] sm:$0xff]  }
  0xee   :  { %1602 = vmatpush1.bf16.msra.mxu0 %v5667_v30  ;;  %v5755_v30 = vld [vmem:[#allocation2 + $0x58c] ss:$16 sps:$4 sm:$0xff]  }
  0xef   :  { %1741 = vmatpush1.bf16.msra.mxu1 %v5670_v31  ;;  %1603 = vmatprep.subr.bf16.mxu0 %v5675_v32  ;;  %v5797_v31 = vld [vmem:[#allocation5 + $0x60] sm:$0xff]   ;;  %v5753_v32 = vld [vmem:[#allocation2 + $0x588] ss:$16 sps:$4 sm:$0xff]  }
  0xf0   :  { %1742 = vmatprep.subr.bf16.mxu1 %v5678_v33  ;;  %v5798_v33 = vld [vmem:[#allocation5 + $0x20] sm:$0xff]  }
  0xf2   :  { %1604 = vmatpush1.bf16.msra.mxu0 %v5673_v34  ;;  %v5758_v34 = vld [vmem:[#allocation2 + $0x5ac] ss:$16 sps:$4 sm:$0xff]  }
  0xf3   :  { %1743 = vmatpush1.bf16.msra.mxu1 %v5676_v35  ;;  %1605 = vmatprep.subr.bf16.mxu0 %v5681_v36  ;;  %v5799_v35 = vld [vmem:[#allocation5 + $0x68] sm:$0xff]  }
  0xf4   :  { %1744 = vmatprep.subr.bf16.mxu1 %v5684_v37  ;;  %v5756_v36 = vld [vmem:[#allocation2 + $0x5a8] ss:$16 sps:$4 sm:$0xff]  }
  0xf5   :  { %v5800_v37 = vld [vmem:[#allocation5 + $0x28] sm:$0xff]  }
  0xf6   :  { %1606 = vmatpush1.bf16.msra.mxu0 %v5679_v38  ;;  %v5761_v38 = vld [vmem:[#allocation2 + $0x5cc] ss:$16 sps:$4 sm:$0xff]  }
  0xf7   :  { %1745 = vmatpush1.bf16.msra.mxu1 %v5682_v39  ;;  %1607 = vmatprep.subr.bf16.mxu0 %v5687_v40  ;;  %v5759_v39 = vld [vmem:[#allocation2 + $0x5c8] ss:$16 sps:$4 sm:$0xff]   ;;  %v5764_v40 = vld [vmem:[#allocation2 + $0x5ec] ss:$16 sps:$4 sm:$0xff]  }
  0xf8   :  { %1746 = vmatprep.subr.bf16.mxu1 %v5690_v41  ;;  %v5762_v41 = vld [vmem:[#allocation2 + $0x5e8] ss:$16 sps:$4 sm:$0xff]  }
  0xfa   :  { %1608 = vmatpush1.bf16.msra.mxu0 %v5685_v42  ;;  %v5767_v42 = vld [vmem:[#allocation2 + $0x60c] ss:$16 sps:$4 sm:$0xff]  }
  0xfb   :  { %1747 = vmatpush1.bf16.msra.mxu1 %v5688_v43  ;;  %1609 = vmatprep.subr.bf16.mxu0 %v5693_v44  ;;  %v5765_v43 = vld [vmem:[#allocation2 + $0x608] ss:$16 sps:$4 sm:$0xff]   ;;  %v5770_v44 = vld [vmem:[#allocation2 + $0x62c] ss:$16 sps:$4 sm:$0xff]  }
  0xfc   :  { %1757 = vmatprep.subr.bf16.mxu1 %v5696_v45  ;;  %v5768_v45 = vld [vmem:[#allocation2 + $0x628] ss:$16 sps:$4 sm:$0xff]  }
  0xfe   :  { %1749 = vmatmul.mubr.bf16.vlgmr.msra.gmra.mrb[4].mxu1 %v6614_v11  ;;  %1610 = vmatpush1.bf16.msra.mxu0 %v5691_v46  ;;  %v5733_v11 = vld [vmem:[#allocation2 + $0x5e0] ss:$16 sps:$4 sm:$0xff]   ;;  %v5773_v46 = vld [vmem:[#allocation2 + $0x64c] ss:$16 sps:$4 sm:$0xff]  }
  0xff   :  { %1758 = vmatpush1.bf16.msra.mxu1 %v5694_v47  ;;  %1611 = vmatprep.subr.bf16.mxu0 %v5699_v48  ;;  %v5771_v47 = vld [vmem:[#allocation2 + $0x648] ss:$16 sps:$4 sm:$0xff]   ;;  %v5776_v48 = vld [vmem:[#allocation2 + $0x66c] ss:$16 sps:$4 sm:$0xff]  }
 0x100   :  { %1759 = vmatprep.subr.bf16.mxu1 %v5702_v49  ;;  %1789 = vmatprep.mubr.bf16.mxu1 %v6623_v17  ;;  %v5790_v17 = vld [vmem:[#allocation5] sm:$0xff]   ;;  %v5774_v49 = vld [vmem:[#allocation2 + $0x668] ss:$16 sps:$4 sm:$0xff]  }
 0x102   :  { %1612 = vmatpush1.bf16.msra.mxu0 %v5697_v50  ;;  %v5779_v50 = vld [vmem:[#allocation2 + $0x68c] ss:$16 sps:$4 sm:$0xff]  }
 0x103   :  { %1760 = vmatpush1.bf16.msra.mxu1 %v5700_v51  ;;  %1613 = vmatprep.subr.bf16.mxu0 %v5705_v52  ;;  %v5777_v51 = vld [vmem:[#allocation2 + $0x688] ss:$16 sps:$4 sm:$0xff]   ;;  %v5782_v52 = vld [vmem:[#allocation2 + $0x6ac] ss:$16 sps:$4 sm:$0xff]  }
 0x104   :  { %1761 = vmatprep.subr.bf16.mxu1 %v5708_v53  ;;  %v5780_v53 = vld [vmem:[#allocation2 + $0x6a8] ss:$16 sps:$4 sm:$0xff]  }
 0x106   :  { %1614 = vmatpush1.bf16.msra.mxu0 %v5703_v54  ;;  %v5785_v54 = vld [vmem:[#allocation2 + $0x6cc] ss:$16 sps:$4 sm:$0xff]  }
 0x107   :  { %1762 = vmatpush1.bf16.msra.mxu1 %v5706_v55  ;;  %1615 = vmatprep.subr.bf16.mxu0 %v5711_v56  ;;  %v5783_v56 = vld [vmem:[#allocation2 + $0x6c8] ss:$16 sps:$4 sm:$0xff]  }
 0x108   :  { %1763 = vmatprep.subr.bf16.mxu1 %v5714_v57 }
 0x10a   :  { %1616 = vmatpush1.bf16.msra.mxu0 %v5709_v58  ;;  %v5788_v58 = vld [vmem:[#allocation2 + $0x6ec] ss:$16 sps:$4 sm:$0xff]  }
 0x10b   :  { %1764 = vmatpush1.bf16.msra.mxu1 %v5712_v59  ;;  %1617 = vmatprep.subr.bf16.mxu0 %v5717_v60 }
 0x10c   :  { %1765 = vmatprep.subr.bf16.mxu1 %v5720_v61  ;;  %v5786_v61 = vld [vmem:[#allocation2 + $0x6e8] ss:$16 sps:$4 sm:$0xff]  }
 0x10e   :  { %1618 = vmatpush1.bf16.msra.mxu0 %v5715_v62  ;;  %v6251_v62 = vld [vmem:[%s6768_s0 + $0x18] ss:$0 sps:$4 sm:$0xff]  }
 0x10f   :  { %1766 = vmatpush1.bf16.msra.mxu1 %v5718_v63  ;;  %1619 = vmatprep.subr.bf16.mxu0 %v5723_v1  ;;  %v5801_v63 = vld [vmem:[#allocation5 + $0x70] sm:$0xff]  }
 0x110   :  { %1767 = vmatprep.subr.bf16.mxu1 %v5726_v2  ;;  %v5802_v1 = vld [vmem:[#allocation5 + $0x30] sm:$0xff]   ;;  %v5803_v2 = vld [vmem:[#allocation5 + $0x78] sm:$0xff]  }
 0x112   :  { %1620 = vmatpush1.bf16.msra.mxu0 %v5721_v3  ;;  %v5804_v3 = vld [vmem:[#allocation5 + $0x38] sm:$0xff]  }
 0x113   :  { %1768 = vmatpush1.bf16.msra.mxu1 %v5724_v4  ;;  %1621 = vmatprep.subr.bf16.mxu0 %v5729_v5  ;;  %v5805_v4 = vld [vmem:[#allocation7 + $0x40] sm:$0xff]  }
 0x114   :  { %1769 = vmatprep.subr.bf16.mxu1 %v5732_v6  ;;  %v5821_v5 = vld [vmem:[#allocation5 + $0xc0] sm:$0xff]  }
 0x115   :  { %v5822_v6 = vld [vmem:[#allocation5 + $0x80] sm:$0xff]  }
 0x116   :  { %1622 = vmatpush1.bf16.msra.mxu0 %v5727_v7  ;;  %v5823_v7 = vld [vmem:[#allocation5 + $0xc8] sm:$0xff]  }
 0x117   :  { %1770 = vmatpush1.bf16.msra.mxu1 %v5730_v8  ;;  %1623 = vmatprep.subr.bf16.mxu0 %v5735_v9  ;;  %v5824_v8 = vld [vmem:[#allocation5 + $0x88] sm:$0xff]   ;;  %v5825_v9 = vld [vmem:[#allocation5 + $0xd0] sm:$0xff]  }
 0x118   :  { %1771 = vmatprep.subr.bf16.mxu1 %v5738_v10  ;;  %v5826_v10 = vld [vmem:[#allocation5 + $0x90] sm:$0xff]  }
 0x11a   :  { %1624 = vmatpush1.bf16.msra.mxu0 %v5733_v11  ;;  %v5827_v11 = vld [vmem:[#allocation5 + $0xd8] sm:$0xff]  }
 0x11b   :  { %1772 = vmatpush1.bf16.msra.mxu1 %v5736_v12  ;;  %5255 = vmatprep.subr.bf16.mxu0 %v5789_v14  ;;  %v5828_v12 = vld [vmem:[#allocation5 + $0x98] sm:$0xff]   ;;  %v5830_v14 = vld [vmem:[#allocation5 + $0xa0] sm:$0xff]  }
 0x11c   :  { %1773 = vmatprep.subr.bf16.mxu1 %v5743_v13  ;;  %v5829_v13 = vld [vmem:[#allocation5 + $0xe0] sm:$0xff]  }
 0x11d   :  { %1626 = vmatmul.mubr.bf16.vlgmr.msra.gmra.mrb[0].mxu0 %v4706_v18 }
 0x11e   :  { %5256 = vmatpush3.bf16.msra.mxu0 %v5790_v17  ;;  %v5832_v17 = vld [vmem:[#allocation5 + $0xa8] sm:$0xff]  }
 0x11f   :  { %1774 = vmatpush1.bf16.msra.mxu1 %v5741_v15  ;;  %5257 = vmatprep.subr.bf16.mxu0 %v5791_v20  ;;  %v5831_v15 = vld [vmem:[#allocation5 + $0xe8] sm:$0xff]   ;;  %v5835_v20 = vld [vmem:[#allocation5 + $0xf8] sm:$0xff]  }
 0x120   :  { %1775 = vmatprep.subr.bf16.mxu1 %v5746_v19  ;;  %v5834_v19 = vld [vmem:[#allocation5 + $0xb0] sm:$0xff]  }
 0x122   :  { %5258 = vmatpush3.bf16.msra.mxu0 %v5792_v22  ;;  %v5837_v22 = vld [vmem:[#allocation7 + $0xc0] sm:$0xff]  }
 0x123   :  { %1776 = vmatpush1.bf16.msra.mxu1 %v5744_v21  ;;  %5259 = vmatprep.subr.bf16.mxu0 %v5793_v24  ;;  %v5836_v21 = vld [vmem:[#allocation5 + $0xb8] sm:$0xff]  }
 0x124   :  { %1777 = vmatprep.subr.bf16.mxu1 %v5749_v23  ;;  %v346_v23 = vlaneseq }
 0x126   :  { %5260 = vmatpush3.bf16.msra.mxu0 %v5794_v26  ;;  %v6639_v24 = vshrl.u32 %v346_v23, 7  ;;  %v344_v26 = vld [vmem:[%s6771_s3] sm:$0xf] }
 0x127   :  { %1778 = vmatpush1.bf16.msra.mxu1 %v5747_v25  ;;  %5261 = vmatprep.subr.bf16.mxu0 %v5795_v28  ;;  %v5853_v23 = vld [vmem:[#allocation8] ss:$16 sps:$4 sm:$0xff]  }
 0x128   :  { %1779 = vmatprep.subr.bf16.mxu1 %v5752_v27  ;;  %v6642_v25 = vsub.s32 0, %v6639_v24  ;;  %v6648_v27 = vsub.s32 1, %v6639_v24 }
 0x12a   :  { %5262 = vmatpush3.bf16.msra.mxu0 %v5796_v29  ;;  %v349_v28 = vrot.slane %v344_v26, %v6642_v25 }
 0x12b   :  { %1780 = vmatpush1.bf16.msra.mxu1 %v5750_v16  ;;  %5263 = vmatprep.subr.bf16.mxu0 %v5797_v31  ;;  %v353_v16 = vrot.slane %v344_v26, %v6648_v27 }
 0x12c   :  { %1781 = vmatprep.subr.bf16.mxu1 %v5755_v30 }
 0x12e   :  { %5264 = vmatpush3.bf16.msra.mxu0 %v5798_v33 }
 0x12f   :  { %1782 = vmatpush1.bf16.msra.mxu1 %v5753_v32  ;;  %5265 = vmatprep.subr.bf16.mxu0 %v5799_v35 }
 0x130   :  { %1783 = vmatprep.subr.bf16.mxu1 %v5758_v34 }
 0x132   :  { %5266 = vmatpush3.bf16.msra.mxu0 %v5800_v37 }
 0x133   :  { %1784 = vmatpush1.bf16.msra.mxu1 %v5756_v36  ;;  %5267 = vmatprep.subr.bf16.mxu0 %v5801_v63 }
 0x134   :  { %1785 = vmatprep.subr.bf16.mxu1 %v5761_v38 }
 0x136   :  { %5268 = vmatpush3.bf16.msra.mxu0 %v5802_v1 }
 0x137   :  { %1786 = vmatpush1.bf16.msra.mxu1 %v5759_v39  ;;  %5269 = vmatprep.subr.bf16.mxu0 %v5803_v2 }
 0x138   :  { %1787 = vmatprep.subr.bf16.mxu1 %v5764_v40  ;;  %v5806_v40 = vld [vmem:[#allocation7] sm:$0xff]  }
 0x13a   :  { %5270 = vmatpush3.bf16.msra.mxu0 %v5804_v3 }
 0x13b   :  { %1788 = vmatpush1.bf16.msra.mxu1 %v5762_v41  ;;  %5299 = vmatprep.subr.bf16.mxu0 %v5805_v4 }
 0x13c   :  { %1798 = vmatprep.subr.bf16.mxu1 %v5767_v42  ;;  %v5807_v42 = vld [vmem:[#allocation7 + $0x48] sm:$0xff]  }
 0x13e   :  { %1790 = vmatmul.mubr.bf16.vlgmr.msra.gmra.mrb[4].mxu1 %v4706_v18  ;;  %v5833_v18 = vld [vmem:[#allocation5 + $0xf0] sm:$0xff]  }
 0x13f   :  { %1799 = vmatpush1.bf16.msra.mxu1 %v5765_v43  ;;  %1830 = vmatprep.mubr.bf16.mxu1 %v6449_v0  ;;  %v5808_v43 = vld [vmem:[#allocation7 + $0x8] sm:$0xff]  }
 0x140   :  { %1800 = vmatprep.subr.bf16.mxu1 %v5770_v44  ;;  %v5809_v44 = vld [vmem:[#allocation7 + $0x50] sm:$0xff]  }
 0x143   :  { %1801 = vmatpush1.bf16.msra.mxu1 %v5768_v45  ;;  %v5810_v45 = vld [vmem:[#allocation7 + $0x10] sm:$0xff]  }
 0x144   :  { %1802 = vmatprep.subr.bf16.mxu1 %v5773_v46  ;;  %v5811_v46 = vld [vmem:[#allocation7 + $0x58] sm:$0xff]  }
 0x147   :  { %1803 = vmatpush1.bf16.msra.mxu1 %v5771_v47  ;;  %v5812_v47 = vld [vmem:[#allocation7 + $0x18] sm:$0xff]  }
 0x148   :  { %1804 = vmatprep.subr.bf16.mxu1 %v5776_v48  ;;  %v5813_v48 = vld [vmem:[#allocation7 + $0x60] sm:$0xff]  }
 0x14b   :  { %1805 = vmatpush1.bf16.msra.mxu1 %v5774_v49  ;;  %v5814_v49 = vld [vmem:[#allocation7 + $0x20] sm:$0xff]  }
 0x14c   :  { %1806 = vmatprep.subr.bf16.mxu1 %v5779_v50  ;;  %v5815_v50 = vld [vmem:[#allocation7 + $0x68] sm:$0xff]  }
 0x14f   :  { %1807 = vmatpush1.bf16.msra.mxu1 %v5777_v51  ;;  %v5816_v51 = vld [vmem:[#allocation7 + $0x28] sm:$0xff]  }
 0x150   :  { %1808 = vmatprep.subr.bf16.mxu1 %v5782_v52  ;;  %v5817_v52 = vld [vmem:[#allocation7 + $0x70] sm:$0xff]  }
 0x151   :  { %v6632_v55 = vpop.f32.mrb[0].mxu1 }
 0x152   :  { %v6634_v57 = vpop.f32.mrb[1].mxu1 }
 0x153   :  { %v1672_v59 = vpop.f32.mrb[2].mxu1  ;;  %1809 = vmatpush1.bf16.msra.mxu1 %v5780_v53  ;;  %v5818_v53 = vld [vmem:[#allocation7 + $0x30] sm:$0xff]  }
 0x154   :  { %v1673_v60 = vpop.f32.mrb[3].mxu1  ;;  %1810 = vmatprep.subr.bf16.mxu1 %v5785_v54  ;;  %v5819_v54 = vld [vmem:[#allocation7 + $0x78] sm:$0xff]  }
 0x157   :  { %1811 = vmatpush1.bf16.msra.mxu1 %v5783_v56  ;;  %v6656_v56 = vsub.s32 2, %v6639_v24 }
 0x158   :  { %1812 = vmatprep.subr.bf16.mxu1 %v5788_v58 }
 0x159   :  { %v357_v58 = vrot.slane %v344_v26, %v6656_v56 }
 0x15b   :  { %1813 = vmatpush1.bf16.msra.mxu1 %v5786_v61 }
 0x15c   :  { %5277 = vmatprep.subr.bf16.mxu1 %v5821_v5 }
 0x15e   :  { %1831 = vmatmul.mubr.bf16.vlgmr.msra.gmra.mrb[4].mxu1 %v6251_v62 }
 0x15f   :  { %5278 = vmatpush3.bf16.msra.mxu1 %v5822_v6  ;;  %v5838_v6 = vld [vmem:[#allocation7 + $0x80] sm:$0xff]  }
 0x160   :  { %5279 = vmatprep.subr.bf16.mxu1 %v5823_v7 }
 0x163   :  { %5280 = vmatpush3.bf16.msra.mxu1 %v5824_v8  ;;  %v5839_v8 = vld [vmem:[#allocation7 + $0xc8] sm:$0xff]  }
 0x164   :  { %5281 = vmatprep.subr.bf16.mxu1 %v5825_v9  ;;  %v5840_v9 = vld [vmem:[#allocation7 + $0x88] sm:$0xff]  }
 0x167   :  { %5282 = vmatpush3.bf16.msra.mxu1 %v5826_v10  ;;  %v5841_v10 = vld [vmem:[#allocation7 + $0xd0] sm:$0xff]  }
 0x168   :  { %5283 = vmatprep.subr.bf16.mxu1 %v5827_v11  ;;  %v5842_v11 = vld [vmem:[#allocation7 + $0x90] sm:$0xff]  }
 0x16b   :  { %5284 = vmatpush3.bf16.msra.mxu1 %v5828_v12  ;;  %v5843_v12 = vld [vmem:[#allocation7 + $0xd8] sm:$0xff]  }
 0x16c   :  { %5285 = vmatprep.subr.bf16.mxu1 %v5829_v13  ;;  %v5844_v13 = vld [vmem:[#allocation7 + $0x98] sm:$0xff]  }
 0x16f   :  { %5286 = vmatpush3.bf16.msra.mxu1 %v5830_v14  ;;  %v5845_v14 = vld [vmem:[#allocation7 + $0xe0] sm:$0xff]  }
 0x170   :  { %5287 = vmatprep.subr.bf16.mxu1 %v5831_v15  ;;  %v5846_v15 = vld [vmem:[#allocation7 + $0xa0] sm:$0xff]  }
 0x173   :  { %5288 = vmatpush3.bf16.msra.mxu1 %v5832_v17  ;;  %v5847_v17 = vld [vmem:[#allocation7 + $0xe8] sm:$0xff]  }
 0x174   :  { %5289 = vmatprep.subr.bf16.mxu1 %v5833_v18  ;;  %v5848_v18 = vld [vmem:[#allocation7 + $0xa8] sm:$0xff]  }
 0x177   :  { %5290 = vmatpush3.bf16.msra.mxu1 %v5834_v19  ;;  %v5849_v19 = vld [vmem:[#allocation7 + $0xf0] sm:$0xff]  }
 0x178   :  { %5291 = vmatprep.subr.bf16.mxu1 %v5835_v20  ;;  %v5850_v20 = vld [vmem:[#allocation7 + $0xb0] sm:$0xff]  }
 0x17b   :  { %5292 = vmatpush3.bf16.msra.mxu1 %v5836_v21  ;;  %v5851_v21 = vld [vmem:[#allocation7 + $0xf8] sm:$0xff]  }
 0x17c   :  { %5321 = vmatprep.subr.bf16.mxu1 %v5837_v22  ;;  %v5852_v22 = vld [vmem:[#allocation7 + $0xb8] sm:$0xff]  }
 0x1f0   :  { %v1627_v29 = vpop.f32.mrb[0].mxu0 }
 0x1f1   :  { %v5387_v30 = vadd.f32 %v1627_v29, %v349_v28  ;;  %v1629_v31 = vpop.f32.mrb[1].mxu0  ;;  %v5856_v28 = vld [vmem:[#allocation8 + $0x8] ss:$16 sps:$4 sm:$0xff]   ;;  %v5861_v29 = vld [vmem:[#allocation8 + $0x24] ss:$16 sps:$4 sm:$0xff]  }
 0x1f2   :  { %v5389_v32 = vadd.f32 %v1629_v31, %v353_v16  ;;  %v1631_v33 = vpop.f32.mrb[2].mxu0  ;;  %v5858_v16 = vld [vmem:[#allocation8 + $0xc] ss:$16 sps:$4 sm:$0xff]   ;;  %v5859_v31 = vld [vmem:[#allocation8 + $0x20] ss:$16 sps:$4 sm:$0xff]  }
 0x1f3   :  { %v5388_v34 = vadd.f32 %v5387_v30, %v6632_v55  ;;  %v1632_v35 = vpop.f32.mrb[3].mxu0  ;;  %v5820_v55 = vld [vmem:[#allocation7 + $0x38] sm:$0xff]   ;;  %v5867_v33 = vld [vmem:[#allocation8 + $0x44] ss:$16 sps:$4 sm:$0xff]  }
 0x1f4   :  { %v5390_v36 = vadd.f32 %v5389_v32, %v6634_v57  ;;  %v6659_v57 = vsub.s32 3, %v6639_v24  ;;  %v5864_v30 = vld [vmem:[#allocation8 + $0x2c] ss:$16 sps:$4 sm:$0xff]   ;;  %v5862_v32 = vld [vmem:[#allocation8 + $0x28] ss:$16 sps:$4 sm:$0xff]  }
 0x1f5   :  { %v1839_v37 = vmax.f32 %v5388_v34, 0.0  ;;  %v5870_v34 = vld [vmem:[#allocation8 + $0x4c] ss:$16 sps:$4 sm:$0xff]   ;;  %v5865_v35 = vld [vmem:[#allocation8 + $0x40] ss:$16 sps:$4 sm:$0xff]  }
 0x1f6   :  { %v1840_v38 = vmax.f32 %v5390_v36, 0.0  ;;  %v361_v59 = vrot.slane %v344_v26, %v6659_v57  ;;  %v5855_v26 = vld [vmem:[#allocation8 + $0x4] ss:$16 sps:$4 sm:$0xff]  }
 0x1f7   :  { %v1843_v41 = vpack.c.bf16 %v1839_v37, %v1839_v37  ;;  %v5873_v36 = vld [vmem:[#allocation8 + $0x64] ss:$16 sps:$4 sm:$0xff]   ;;  %v5876_v37 = vld [vmem:[#allocation8 + $0x6c] ss:$16 sps:$4 sm:$0xff]  }
 0x1f8   :  { %v1844_v39 = vpack.c.bf16 %v1840_v38, %v1840_v38  ;;  %v5871_v38 = vld [vmem:[#allocation8 + $0x60] ss:$16 sps:$4 sm:$0xff]  }
 0x1fa   :  { %2142 = vmatprep.mubr.bf16.mxu0 %v1844_v39 }
 0x1fb   :  { %2143 = vmatmul.mubr.bf16.vlgmr.msra.gmra.mrb[4].mxu0 %v1843_v41 }
 0x1fc   :  { %5300 = vmatpush3.bf16.msra.mxu0 %v5806_v40  ;;  %2485 = vmatprep.mubr.bf16.mxu0 %v1844_v39  ;;  %v5874_v39 = vld [vmem:[#allocation8 + $0x68] ss:$16 sps:$4 sm:$0xff]   ;;  %v5879_v40 = vld [vmem:[#allocation8 + $0x84] ss:$16 sps:$4 sm:$0xff]  }
 0x1fd   :  { %5301 = vmatprep.subr.bf16.mxu0 %v5807_v42  ;;  %v5877_v42 = vld [vmem:[#allocation8 + $0x80] ss:$16 sps:$4 sm:$0xff]  }
 0x200   :  { %5302 = vmatpush3.bf16.msra.mxu0 %v5808_v43  ;;  %v5880_v43 = vld [vmem:[#allocation8 + $0x88] ss:$16 sps:$4 sm:$0xff]  }
 0x201   :  { %5303 = vmatprep.subr.bf16.mxu0 %v5809_v44  ;;  %v5885_v44 = vld [vmem:[#allocation8 + $0xa4] ss:$16 sps:$4 sm:$0xff]  }
 0x204   :  { %5304 = vmatpush3.bf16.msra.mxu0 %v5810_v45  ;;  %v5888_v45 = vld [vmem:[#allocation8 + $0xac] ss:$16 sps:$4 sm:$0xff]  }
 0x205   :  { %5305 = vmatprep.subr.bf16.mxu0 %v5811_v46  ;;  %v5883_v46 = vld [vmem:[#allocation8 + $0xa0] ss:$16 sps:$4 sm:$0xff]  }
 0x208   :  { %5306 = vmatpush3.bf16.msra.mxu0 %v5812_v47  ;;  %v5886_v47 = vld [vmem:[#allocation8 + $0xa8] ss:$16 sps:$4 sm:$0xff]  }
 0x209   :  { %5307 = vmatprep.subr.bf16.mxu0 %v5813_v48  ;;  %v5891_v48 = vld [vmem:[#allocation8 + $0xc4] ss:$16 sps:$4 sm:$0xff]  }
 0x20c   :  { %5308 = vmatpush3.bf16.msra.mxu0 %v5814_v49  ;;  %v5894_v49 = vld [vmem:[#allocation8 + $0xcc] ss:$16 sps:$4 sm:$0xff]  }
 0x20d   :  { %5309 = vmatprep.subr.bf16.mxu0 %v5815_v50  ;;  %v5889_v50 = vld [vmem:[#allocation8 + $0xc0] ss:$16 sps:$4 sm:$0xff]  }
 0x210   :  { %5310 = vmatpush3.bf16.msra.mxu0 %v5816_v51  ;;  %v5892_v51 = vld [vmem:[#allocation8 + $0xc8] ss:$16 sps:$4 sm:$0xff]  }
 0x211   :  { %5311 = vmatprep.subr.bf16.mxu0 %v5817_v52  ;;  %v5895_v52 = vld [vmem:[#allocation8 + $0xe0] ss:$16 sps:$4 sm:$0xff]  }
 0x214   :  { %5312 = vmatpush3.bf16.msra.mxu0 %v5818_v53  ;;  %v5897_v53 = vld [vmem:[#allocation8 + $0xe4] ss:$16 sps:$4 sm:$0xff]  }
 0x215   :  { %5313 = vmatprep.subr.bf16.mxu0 %v5819_v54  ;;  %v5898_v54 = vld [vmem:[#allocation8 + $0xe8] ss:$16 sps:$4 sm:$0xff]  }
 0x218   :  { %5314 = vmatpush3.bf16.msra.mxu0 %v5820_v55  ;;  %v5900_v55 = vld [vmem:[#allocation8 + $0xec] ss:$16 sps:$4 sm:$0xff]  }
 0x219   :  { %2753 = vmatprep.subr.bf16.mxu0 %v5855_v26 }
 0x21b   :  { %2486 = vmatmul.mubr.bf16.vlgmr.msra.gmra.mrb[8].mxu0 %v1843_v41  ;;  %v5882_v41 = vld [vmem:[#allocation8 + $0x8c] ss:$16 sps:$4 sm:$0xff]  }
 0x21c   :  { %2785 = vmatprep.mubr.bf16.mxu0 %v6449_v0  ;;  %2754 = vmatpush1.bf16.msra.mxu0 %v5853_v23 }
 0x21d   :  { %2755 = vmatprep.subr.bf16.mxu0 %v5861_v29 }
 0x220   :  { %2756 = vmatpush1.bf16.msra.mxu0 %v5859_v31 }
 0x221   :  { %2757 = vmatprep.subr.bf16.mxu0 %v5867_v33  ;;  %v5904_v33 = vld [vmem:[#allocation10 + $0x8] ss:$28 sps:$4 sm:$0xff]  }
 0x224   :  { %2758 = vmatpush1.bf16.msra.mxu0 %v5865_v35  ;;  %v5909_v35 = vld [vmem:[#allocation10 + $0x3c] ss:$28 sps:$4 sm:$0xff]  }
 0x225   :  { %2759 = vmatprep.subr.bf16.mxu0 %v5873_v36  ;;  %v5907_v36 = vld [vmem:[#allocation10 + $0x38] ss:$28 sps:$4 sm:$0xff]  }
 0x228   :  { %2760 = vmatpush1.bf16.msra.mxu0 %v5871_v38  ;;  %v5915_v38 = vld [vmem:[#allocation10 + $0x74] ss:$28 sps:$4 sm:$0xff]  }
 0x229   :  { %2761 = vmatprep.subr.bf16.mxu0 %v5879_v40  ;;  %v5913_v40 = vld [vmem:[#allocation10 + $0x70] ss:$28 sps:$4 sm:$0xff]  }
 0x22c   :  { %2762 = vmatpush1.bf16.msra.mxu0 %v5877_v42  ;;  %v5921_v42 = vld [vmem:[#allocation10 + $0xac] ss:$28 sps:$4 sm:$0xff]  }
 0x22d   :  { %2763 = vmatprep.subr.bf16.mxu0 %v5885_v44  ;;  %v5919_v44 = vld [vmem:[#allocation10 + $0xa8] ss:$28 sps:$4 sm:$0xff]  }
 0x230   :  { %2764 = vmatpush1.bf16.msra.mxu0 %v5883_v46  ;;  %v5927_v46 = vld [vmem:[#allocation10 + $0xe4] ss:$28 sps:$4 sm:$0xff]  }
 0x231   :  { %v1832_v60 = vpop.f32.mrb[4].mxu1  ;;  %2765 = vmatprep.subr.bf16.mxu0 %v5891_v48  ;;  %v5925_v48 = vld [vmem:[#allocation10 + $0xe0] ss:$28 sps:$4 sm:$0xff]  }
 0x232   :  { %v5391_v61 = vadd.f32 %v1832_v60, %v357_v58  ;;  %v1834_v62 = vpop.f32.mrb[5].mxu1  ;;  %v5903_v58 = vld [vmem:[#allocation10 + $0x4] ss:$28 sps:$4 sm:$0xff]  }
 0x233   :  { %v5392_v63 = vadd.f32 %v1834_v62, %v361_v59  ;;  %v1836_v1 = vpop.f32.mrb[6].mxu1  ;;  %v5906_v59 = vld [vmem:[#allocation10 + $0xc] ss:$28 sps:$4 sm:$0xff]  }
 0x234   :  { %v1841_v2 = vmax.f32 %v5391_v61, 0.0  ;;  %v1837_v3 = vpop.f32.mrb[7].mxu1  ;;  %2766 = vmatpush1.bf16.msra.mxu0 %v5889_v50  ;;  %v5933_v50 = vld [vmem:[#allocation10 + $0x11c] ss:$28 sps:$4 sm:$0xff]  }
 0x235   :  { %v1842_v4 = vmax.f32 %v5392_v63, 0.0  ;;  %2767 = vmatprep.subr.bf16.mxu0 %v5897_v53  ;;  %v5934_v53 = vld [vmem:[#allocation10 + $0x120] ss:$28 sps:$4 sm:$0xff]  }
 0x236   :  { %v1845_v7 = vpack.c.bf16 %v1841_v2, %v1841_v2 }
 0x237   :  { %v1846_v5 = vpack.c.bf16 %v1842_v4, %v1842_v4 }
 0x238   :  { %2768 = vmatpush1.bf16.msra.mxu0 %v5895_v52  ;;  %v5931_v52 = vld [vmem:[#allocation10 + $0x118] ss:$28 sps:$4 sm:$0xff]  }
 0x239   :  { %2182 = vmatprep.mubr.bf16.mxu1 %v1846_v5  ;;  %4288 = vmatprep.subr.bf16.mxu0 %v5903_v58  ;;  %v5937_v58 = vld [vmem:[#allocation10 + $0x150] ss:$28 sps:$4 sm:$0xff]  }
 0x23a   :  { %2183 = vmatmul.mubr.bf16.vlgmr.msra.gmra.mrb[8].mxu1 %v1845_v7 }
 0x23b   :  { %5322 = vmatpush3.bf16.msra.mxu1 %v5838_v6  ;;  %2525 = vmatprep.mubr.bf16.mxu1 %v1846_v5 }
 0x23c   :  { %5323 = vmatprep.subr.bf16.mxu1 %v5839_v8 }
 0x23f   :  { %5324 = vmatpush3.bf16.msra.mxu1 %v5840_v9 }
 0x240   :  { %5325 = vmatprep.subr.bf16.mxu1 %v5841_v10 }
 0x243   :  { %5326 = vmatpush3.bf16.msra.mxu1 %v5842_v11 }
 0x244   :  { %5327 = vmatprep.subr.bf16.mxu1 %v5843_v12 }
 0x247   :  { %5328 = vmatpush3.bf16.msra.mxu1 %v5844_v13 }
 0x248   :  { %5329 = vmatprep.subr.bf16.mxu1 %v5845_v14 }
 0x24b   :  { %5330 = vmatpush3.bf16.msra.mxu1 %v5846_v15  ;;  %v4966_v15 = vld [vmem:[%s6775_s7] ss:$0 sm:$0xff] }
 0x24c   :  { %5331 = vmatprep.subr.bf16.mxu1 %v5847_v17 }
 0x24f   :  { %5332 = vmatpush3.bf16.msra.mxu1 %v5848_v18 }
 0x250   :  { %5333 = vmatprep.subr.bf16.mxu1 %v5849_v19 }
 0x253   :  { %5334 = vmatpush3.bf16.msra.mxu1 %v5850_v20 }
 0x254   :  { %5335 = vmatprep.subr.bf16.mxu1 %v5851_v21 }
 0x257   :  { %5336 = vmatpush3.bf16.msra.mxu1 %v5852_v22 }
 0x258   :  { %2794 = vmatprep.subr.bf16.mxu1 %v5858_v16  ;;  %v119_v16 = vld [vmem:[%s6769_s1] sm:$0xff] }
 0x25a   :  { %2526 = vmatmul.mubr.bf16.vlgmr.msra.gmra.mrb[12].mxu1 %v1845_v7  ;;  %v4933_v7 = vld [vmem:[%s6773_s5] ss:$0 sm:$0xff] }
 0x25b   :  { %2826 = vmatprep.mubr.bf16.mxu1 %v6449_v0  ;;  %2795 = vmatpush1.bf16.msra.mxu1 %v5856_v28  ;;  %v5868_v0 = vld [vmem:[#allocation8 + $0x48] ss:$16 sps:$4 sm:$0xff]  }
 0x25c   :  { %2796 = vmatprep.subr.bf16.mxu1 %v5864_v30 }
 0x25f   :  { %2797 = vmatpush1.bf16.msra.mxu1 %v5862_v32  ;;  %v5901_v32 = vld [vmem:[#allocation10] ss:$28 sps:$4 sm:$0xff]  }
 0x260   :  { %2798 = vmatprep.subr.bf16.mxu1 %v5870_v34 }
 0x263   :  { %2799 = vmatpush1.bf16.msra.mxu1 %v5868_v0  ;;  %v5912_v0 = vld [vmem:[#allocation10 + $0x44] ss:$28 sps:$4 sm:$0xff]  }
 0x264   :  { %2800 = vmatprep.subr.bf16.mxu1 %v5876_v37  ;;  %v5910_v37 = vld [vmem:[#allocation10 + $0x40] ss:$28 sps:$4 sm:$0xff]  }
 0x267   :  { %2801 = vmatpush1.bf16.msra.mxu1 %v5874_v39  ;;  %v5918_v39 = vld [vmem:[#allocation10 + $0x7c] ss:$28 sps:$4 sm:$0xff]  }
 0x268   :  { %2802 = vmatprep.subr.bf16.mxu1 %v5882_v41  ;;  %v5916_v41 = vld [vmem:[#allocation10 + $0x78] ss:$28 sps:$4 sm:$0xff]  }
 0x26b   :  { %2803 = vmatpush1.bf16.msra.mxu1 %v5880_v43  ;;  %v5924_v43 = vld [vmem:[#allocation10 + $0xb4] ss:$28 sps:$4 sm:$0xff]  }
 0x26c   :  { %2804 = vmatprep.subr.bf16.mxu1 %v5888_v45  ;;  %v5922_v45 = vld [vmem:[#allocation10 + $0xb0] ss:$28 sps:$4 sm:$0xff]  }
 0x26f   :  { %2805 = vmatpush1.bf16.msra.mxu1 %v5886_v47  ;;  %v5930_v47 = vld [vmem:[#allocation10 + $0xec] ss:$28 sps:$4 sm:$0xff]  }
 0x270   :  { %2806 = vmatprep.subr.bf16.mxu1 %v5894_v49  ;;  %v5928_v49 = vld [vmem:[#allocation10 + $0xe8] ss:$28 sps:$4 sm:$0xff]  }
 0x273   :  { %2807 = vmatpush1.bf16.msra.mxu1 %v5892_v51  ;;  %v5936_v51 = vld [vmem:[#allocation10 + $0x124] ss:$28 sps:$4 sm:$0xff]  }
 0x274   :  { %2808 = vmatprep.subr.bf16.mxu1 %v5900_v55  ;;  %v5942_v55 = vld [vmem:[#allocation10 + $0x15c] ss:$28 sps:$4 sm:$0xff]  }
 0x277   :  { %2809 = vmatpush1.bf16.msra.mxu1 %v5898_v54  ;;  %v5939_v54 = vld [vmem:[#allocation10 + $0x154] ss:$28 sps:$4 sm:$0xff]  }
 0x278   :  { %4370 = vmatprep.subr.bf16.mxu1 %v5906_v59  ;;  %v5940_v59 = vld [vmem:[#allocation10 + $0x158] ss:$28 sps:$4 sm:$0xff]  }
 0x2ce   :  { %v5271_v60 = vpop.f32.mrb[4].mxu0 }
 0x2cf   :  { %v5272_v61 = vpop.f32.mrb[5].mxu0 }
 0x2d0   :  { %v5273_v62 = vadd.f32 %v5272_v61, %v5271_v60  ;;  %v5274_v63 = vpop.f32.mrb[6].mxu0  ;;  %v5945_v60 = vld [vmem:[#allocation10 + $0x18c] ss:$28 sps:$4 sm:$0xff]   ;;  %v5948_v61 = vld [vmem:[#allocation10 + $0x194] ss:$28 sps:$4 sm:$0xff]  }
 0x2d1   :  { %v5275_v1 = vpop.f32.mrb[7].mxu0  ;;  %v5946_v63 = vld [vmem:[#allocation10 + $0x190] ss:$28 sps:$4 sm:$0xff]  }
 0x2d2   :  { %v2145_v10 = vadd.f32 %v5273_v62, %v4933_v7  ;;  %v5943_v62 = vld [vmem:[#allocation10 + $0x188] ss:$28 sps:$4 sm:$0xff]   ;;  %v5955_v7 = vld [vmem:[#allocation10 + $0x1f8] ss:$28 sps:$4 sm:$0xff]  }
 0x2d3   :  { %v5951_v1 = vld [vmem:[#allocation10 + $0x1c4] ss:$28 sps:$4 sm:$0xff]  }
 0x2ee   :  { %v5315_v2 = vpop.f32.mrb[8].mxu0 }
 0x2ef   :  { %v5316_v3 = vpop.f32.mrb[9].mxu0 }
 0x2f0   :  { %v5317_v4 = vadd.f32 %v5316_v3, %v5315_v2  ;;  %v5318_v5 = vpop.f32.mrb[10].mxu0  ;;  %v5954_v2 = vld [vmem:[#allocation10 + $0x1cc] ss:$28 sps:$4 sm:$0xff]   ;;  %v5949_v3 = vld [vmem:[#allocation10 + $0x1c0] ss:$28 sps:$4 sm:$0xff]  }
 0x2f1   :  { %v5319_v6 = vpop.f32.mrb[11].mxu0  ;;  %v5957_v5 = vld [vmem:[#allocation10 + $0x1fc] ss:$28 sps:$4 sm:$0xff]  }
 0x2f2   :  { %v2488_v19 = vadd.f32 %v5317_v4, %v4966_v15  ;;  %v5952_v4 = vld [vmem:[#allocation10 + $0x1c8] ss:$28 sps:$4 sm:$0xff]  }
 0x2f3   :  { %v5960_v6 = vld [vmem:[#allocation10 + $0x204] ss:$28 sps:$4 sm:$0xff]  }
 0x2f4   :  { %v5967_v15 = vld [vmem:[#allocation10 + $0x268] ss:$28 sps:$4 sm:$0xff]  }
 0x30d   :  { %v5293_v8 = vpop.f32.mrb[8].mxu1 }
 0x30e   :  { %v5294_v9 = vpop.f32.mrb[9].mxu1 }
 0x30f   :  { %v5295_v11 = vadd.f32 %v5294_v9, %v5293_v8  ;;  %v5296_v12 = vpop.f32.mrb[10].mxu1  ;;  %v5958_v8 = vld [vmem:[#allocation10 + $0x200] ss:$28 sps:$4 sm:$0xff]   ;;  %v5963_v9 = vld [vmem:[#allocation10 + $0x234] ss:$28 sps:$4 sm:$0xff]  }
 0x310   :  { %v5297_v13 = vpop.f32.mrb[11].mxu1  ;;  %v5964_v12 = vld [vmem:[#allocation10 + $0x238] ss:$28 sps:$4 sm:$0xff]  }
 0x311   :  { %v2185_v14 = vadd.f32 %v5295_v11, %v2145_v10  ;;  %v5966_v10 = vld [vmem:[#allocation10 + $0x23c] ss:$28 sps:$4 sm:$0xff]   ;;  %v5961_v11 = vld [vmem:[#allocation10 + $0x230] ss:$28 sps:$4 sm:$0xff]  }
 0x312   :  { %v5969_v13 = vld [vmem:[#allocation10 + $0x26c] ss:$28 sps:$4 sm:$0xff]  }
 0x313   :  { %4656 = vst [vmem:[#allocation12] sm:$0xff] %v2185_v14 }
 0x32d   :  { %v5337_v17 = vpop.f32.mrb[12].mxu1 }
 0x32e   :  { %v5338_v18 = vpop.f32.mrb[13].mxu1 }
 0x32f   :  { %v5339_v20 = vadd.f32 %v5338_v18, %v5337_v17  ;;  %v5340_v21 = vpop.f32.mrb[14].mxu1  ;;  %v5970_v17 = vld [vmem:[#allocation10 + $0x270] ss:$28 sps:$4 sm:$0xff]   ;;  %v5975_v18 = vld [vmem:[#allocation10 + $0x2a4] ss:$28 sps:$4 sm:$0xff]  }
 0x330   :  { %v5341_v22 = vpop.f32.mrb[15].mxu1  ;;  %v5976_v21 = vld [vmem:[#allocation10 + $0x2a8] ss:$28 sps:$4 sm:$0xff]  }
 0x331   :  { %v2528_v23 = vadd.f32 %v5339_v20, %v2488_v19  ;;  %v5978_v19 = vld [vmem:[#allocation10 + $0x2ac] ss:$28 sps:$4 sm:$0xff]   ;;  %v5973_v20 = vld [vmem:[#allocation10 + $0x2a0] ss:$28 sps:$4 sm:$0xff]  }
 0x332   :  { %v5981_v22 = vld [vmem:[#allocation10 + $0x2dc] ss:$28 sps:$4 sm:$0xff]  }
 0x333   :  { %v2533_v26 = vmul.f32 1.442695, %v2528_v23  ;;  %4657 = vst [vmem:[#allocation14] sm:$0xff] %v2528_v23  ;;  %v5984_v23 = vld [vmem:[#allocation10 + $0x2e4] ss:$28 sps:$4 sm:$0xff]  }
 0x335   :  { %6221 = vpow2.f32 %v2533_v26  ;;  %v5979_v26 = vld [vmem:[#allocation10 + $0x2d8] ss:$28 sps:$4 sm:$0xff]  }
 0x33f   :  { %v6222_v28 = vpop.eup %6221 }
 0x340   :  { %v2535_v29 = vmul.f32 0.5, %v6222_v28  ;;  %v5982_v28 = vld [vmem:[#allocation10 + $0x2e0] ss:$28 sps:$4 sm:$0xff]  }
 0x342   :  { %v2536_v30 = vmul.f32 %v2535_v29, %v119_v16  ;;  %v5987_v16 = vld [vmem:[#allocation10 + $0x314] ss:$28 sps:$4 sm:$0xff]   ;;  %v5990_v29 = vld [vmem:[#allocation10 + $0x31c] ss:$28 sps:$4 sm:$0xff]  }
 0x344   :  { %v2537_v31 = vadd.f32 %v2536_v30, %v2185_v14  ;;  %v5972_v14 = vld [vmem:[#allocation10 + $0x274] ss:$28 sps:$4 sm:$0xff]  }
 0x345   :  { %v5985_v30 = vld [vmem:[#allocation10 + $0x310] ss:$28 sps:$4 sm:$0xff]  }
 0x346   :  { %v2538_v34 = vpack.c.bf16 %v2537_v31, %v2537_v31  ;;  %v5988_v31 = vld [vmem:[#allocation10 + $0x318] ss:$28 sps:$4 sm:$0xff]  }
 0x348   :  { %2786 = vmatmul.mubr.bf16.vlgmr.msra.gmra.mrb[12].mxu0 %v2538_v34  ;;  %2827 = vmatmul.mubr.bf16.vlgmr.msra.gmra.mrb[16].mxu1 %v2538_v34  ;;  %v5991_v34 = vld [vmem:[#allocation10 + $0x348] ss:$28 sps:$4 sm:$0xff]  }
 0x349   :  { %4289 = vmatpush1.bf16.msra.mxu0 %v5901_v32  ;;  %4371 = vmatpush1.bf16.msra.mxu1 %v5904_v33  ;;  %v5993_v32 = vld [vmem:[#allocation10 + $0x34c] ss:$28 sps:$4 sm:$0xff]   ;;  %v5996_v33 = vld [vmem:[#allocation10 + $0x354] ss:$28 sps:$4 sm:$0xff]  }
 0x34a   :  { %4290 = vmatprep.subr.bf16.mxu0 %v5909_v35  ;;  %4372 = vmatprep.subr.bf16.mxu1 %v5912_v0  ;;  %v5994_v35 = vld [vmem:[#allocation10 + $0x350] ss:$28 sps:$4 sm:$0xff]   ;;  %v5999_v0 = vld [vmem:[#allocation10 + $0x384] ss:$28 sps:$4 sm:$0xff]  }
 0x34d   :  { %4291 = vmatpush1.bf16.msra.mxu0 %v5907_v36  ;;  %4373 = vmatpush1.bf16.msra.mxu1 %v5910_v37  ;;  %v6002_v36 = vld [vmem:[#allocation10 + $0x38c] ss:$28 sps:$4 sm:$0xff]   ;;  %v6676_v37 = vld [vmem:[%s6777_s9] sm:$0xf] }
 0x34e   :  { %4292 = vmatprep.subr.bf16.mxu0 %v5915_v38  ;;  %4374 = vmatprep.subr.bf16.mxu1 %v5918_v39  ;;  %v2576_v38 = vrot.slane %v6676_v37, %v6642_v25  ;;  %v2580_v39 = vrot.slane %v6676_v37, %v6648_v27 }
 0x351   :  { %4293 = vmatpush1.bf16.msra.mxu0 %v5913_v40  ;;  %4375 = vmatpush1.bf16.msra.mxu1 %v5916_v41  ;;  %v2588_v40 = vrot.slane %v6676_v37, %v6659_v57 }
 0x352   :  { %4294 = vmatprep.subr.bf16.mxu0 %v5921_v42  ;;  %4376 = vmatprep.subr.bf16.mxu1 %v5924_v43 }
 0x355   :  { %4295 = vmatpush1.bf16.msra.mxu0 %v5919_v44  ;;  %4377 = vmatpush1.bf16.msra.mxu1 %v5922_v45 }
 0x356   :  { %4296 = vmatprep.subr.bf16.mxu0 %v5927_v46  ;;  %4378 = vmatprep.subr.bf16.mxu1 %v5930_v47 }
 0x359   :  { %4297 = vmatpush1.bf16.msra.mxu0 %v5925_v48  ;;  %4379 = vmatpush1.bf16.msra.mxu1 %v5928_v49 }
 0x35a   :  { %4298 = vmatprep.subr.bf16.mxu0 %v5933_v50  ;;  %4380 = vmatprep.subr.bf16.mxu1 %v5936_v51 }
 0x35d   :  { %4299 = vmatpush1.bf16.msra.mxu0 %v5931_v52  ;;  %4381 = vmatpush1.bf16.msra.mxu1 %v5934_v53 }
 0x35e   :  { %4300 = vmatprep.subr.bf16.mxu0 %v5939_v54  ;;  %4382 = vmatprep.subr.bf16.mxu1 %v5942_v55 }
 0x361   :  { %4301 = vmatpush1.bf16.msra.mxu0 %v5937_v58  ;;  %4383 = vmatpush1.bf16.msra.mxu1 %v5940_v59  ;;  %v5997_v58 = vld [vmem:[#allocation10 + $0x380] ss:$28 sps:$4 sm:$0xff]   ;;  %v6000_v59 = vld [vmem:[#allocation10 + $0x388] ss:$28 sps:$4 sm:$0xff]  }
 0x362   :  { %4302 = vmatprep.subr.bf16.mxu0 %v5945_v60  ;;  %4384 = vmatprep.subr.bf16.mxu1 %v5948_v61  ;;  %v6005_v61 = vld [vmem:[#allocation10 + $0x3bc] ss:$28 sps:$4 sm:$0xff]  }
 0x365   :  { %4303 = vmatpush1.bf16.msra.mxu0 %v5943_v62  ;;  %4385 = vmatpush1.bf16.msra.mxu1 %v5946_v63  ;;  %v6008_v62 = vld [vmem:[#allocation10 + $0x3c4] ss:$28 sps:$4 sm:$0xff]  }
 0x366   :  { %4304 = vmatprep.subr.bf16.mxu0 %v5951_v1  ;;  %4386 = vmatprep.subr.bf16.mxu1 %v5954_v2  ;;  %v6003_v1 = vld [vmem:[#allocation10 + $0x3b8] ss:$28 sps:$4 sm:$0xff]   ;;  %v6006_v2 = vld [vmem:[#allocation10 + $0x3c0] ss:$28 sps:$4 sm:$0xff]  }
 0x369   :  { %4305 = vmatpush1.bf16.msra.mxu0 %v5949_v3  ;;  %4387 = vmatpush1.bf16.msra.mxu1 %v5952_v4  ;;  %v6011_v3 = vld [vmem:[#allocation10 + $0x3f4] ss:$28 sps:$4 sm:$0xff]   ;;  %v6014_v4 = vld [vmem:[#allocation10 + $0x3fc] ss:$28 sps:$4 sm:$0xff]  }
 0x36a   :  { %4306 = vmatprep.subr.bf16.mxu0 %v5957_v5  ;;  %4388 = vmatprep.subr.bf16.mxu1 %v5960_v6  ;;  %v6009_v5 = vld [vmem:[#allocation10 + $0x3f0] ss:$28 sps:$4 sm:$0xff]   ;;  %v6012_v6 = vld [vmem:[#allocation10 + $0x3f8] ss:$28 sps:$4 sm:$0xff]  }
 0x36d   :  { %4307 = vmatpush1.bf16.msra.mxu0 %v5955_v7  ;;  %4389 = vmatpush1.bf16.msra.mxu1 %v5958_v8  ;;  %v6017_v7 = vld [vmem:[#allocation10 + $0x42c] ss:$28 sps:$4 sm:$0xff]   ;;  %v6020_v8 = vld [vmem:[#allocation10 + $0x434] ss:$28 sps:$4 sm:$0xff]  }
 0x36e   :  { %4308 = vmatprep.subr.bf16.mxu0 %v5963_v9  ;;  %4390 = vmatprep.subr.bf16.mxu1 %v5966_v10  ;;  %v6015_v9 = vld [vmem:[#allocation10 + $0x428] ss:$28 sps:$4 sm:$0xff]   ;;  %v6018_v10 = vld [vmem:[#allocation10 + $0x430] ss:$28 sps:$4 sm:$0xff]  }
 0x371   :  { %4309 = vmatpush1.bf16.msra.mxu0 %v5961_v11  ;;  %4391 = vmatpush1.bf16.msra.mxu1 %v5964_v12  ;;  %v6023_v11 = vld [vmem:[#allocation10 + $0x464] ss:$28 sps:$4 sm:$0xff]   ;;  %v6026_v12 = vld [vmem:[#allocation10 + $0x46c] ss:$28 sps:$4 sm:$0xff]  }
 0x372   :  { %4310 = vmatprep.subr.bf16.mxu0 %v5969_v13  ;;  %4392 = vmatprep.subr.bf16.mxu1 %v5972_v14  ;;  %v6021_v13 = vld [vmem:[#allocation10 + $0x460] ss:$28 sps:$4 sm:$0xff]   ;;  %v6024_v14 = vld [vmem:[#allocation10 + $0x468] ss:$28 sps:$4 sm:$0xff]  }
 0x375   :  { %4311 = vmatpush1.bf16.msra.mxu0 %v5967_v15  ;;  %4393 = vmatpush1.bf16.msra.mxu1 %v5970_v17  ;;  %v6029_v15 = vld [vmem:[#allocation10 + $0x49c] ss:$28 sps:$4 sm:$0xff]   ;;  %v6032_v17 = vld [vmem:[#allocation10 + $0x4a4] ss:$28 sps:$4 sm:$0xff]  }
 0x376   :  { %4312 = vmatprep.subr.bf16.mxu0 %v5975_v18  ;;  %4394 = vmatprep.subr.bf16.mxu1 %v5978_v19  ;;  %v6027_v18 = vld [vmem:[#allocation10 + $0x498] ss:$28 sps:$4 sm:$0xff]   ;;  %v6030_v19 = vld [vmem:[#allocation10 + $0x4a0] ss:$28 sps:$4 sm:$0xff]  }
 0x379   :  { %4313 = vmatpush1.bf16.msra.mxu0 %v5973_v20  ;;  %4395 = vmatpush1.bf16.msra.mxu1 %v5976_v21  ;;  %v6035_v20 = vld [vmem:[#allocation10 + $0x4d4] ss:$28 sps:$4 sm:$0xff]   ;;  %v6038_v21 = vld [vmem:[#allocation10 + $0x4dc] ss:$28 sps:$4 sm:$0xff]  }
 0x37a   :  { %4314 = vmatprep.subr.bf16.mxu0 %v5981_v22  ;;  %4396 = vmatprep.subr.bf16.mxu1 %v5984_v23  ;;  %v6033_v22 = vld [vmem:[#allocation10 + $0x4d0] ss:$28 sps:$4 sm:$0xff]   ;;  %v6036_v23 = vld [vmem:[#allocation10 + $0x4d8] ss:$28 sps:$4 sm:$0xff]  }
 0x37d   :  { %4315 = vmatpush1.bf16.msra.mxu0 %v5979_v26  ;;  %4397 = vmatpush1.bf16.msra.mxu1 %v5982_v28  ;;  %v6041_v26 = vld [vmem:[#allocation10 + $0x50c] ss:$28 sps:$4 sm:$0xff]   ;;  %v6044_v28 = vld [vmem:[#allocation10 + $0x514] ss:$28 sps:$4 sm:$0xff]  }
 0x37e   :  { %4316 = vmatprep.subr.bf16.mxu0 %v5987_v16  ;;  %4398 = vmatprep.subr.bf16.mxu1 %v5990_v29  ;;  %v6039_v16 = vld [vmem:[#allocation10 + $0x508] ss:$28 sps:$4 sm:$0xff]   ;;  %v6042_v29 = vld [vmem:[#allocation10 + $0x510] ss:$28 sps:$4 sm:$0xff]  }
 0x381   :  { %4317 = vmatpush1.bf16.msra.mxu0 %v5985_v30  ;;  %4399 = vmatpush1.bf16.msra.mxu1 %v5988_v31  ;;  %v6047_v30 = vld [vmem:[#allocation10 + $0x544] ss:$28 sps:$4 sm:$0xff]   ;;  %v6050_v31 = vld [vmem:[#allocation10 + $0x54c] ss:$28 sps:$4 sm:$0xff]  }
 0x382   :  { %4318 = vmatprep.subr.bf16.mxu0 %v5993_v32  ;;  %4400 = vmatprep.subr.bf16.mxu1 %v5996_v33  ;;  %v6045_v32 = vld [vmem:[#allocation10 + $0x540] ss:$28 sps:$4 sm:$0xff]   ;;  %v6048_v33 = vld [vmem:[#allocation10 + $0x548] ss:$28 sps:$4 sm:$0xff]  }
 0x385   :  { %4319 = vmatpush1.bf16.msra.mxu0 %v5991_v34  ;;  %4401 = vmatpush1.bf16.msra.mxu1 %v5994_v35  ;;  %v6053_v34 = vld [vmem:[#allocation10 + $0x57c] ss:$28 sps:$4 sm:$0xff]   ;;  %v6056_v35 = vld [vmem:[#allocation10 + $0x584] ss:$28 sps:$4 sm:$0xff]  }
 0x386   :  { %4329 = vmatprep.subr.bf16.mxu0 %v5999_v0  ;;  %4411 = vmatprep.subr.bf16.mxu1 %v6002_v36  ;;  %v6051_v0 = vld [vmem:[#allocation10 + $0x578] ss:$28 sps:$4 sm:$0xff]   ;;  %v6054_v36 = vld [vmem:[#allocation10 + $0x580] ss:$28 sps:$4 sm:$0xff]  }
 0x41b   :  { %v2787_v41 = vpop.f32.mrb[12].mxu0  ;;  %v6684_v42 = vpop.f32.mrb[16].mxu1 }
 0x41c   :  { %v2788_v43 = vadd.f32 %v2787_v41, %v2576_v38  ;;  %v2789_v44 = vpop.f32.mrb[13].mxu0  ;;  %v2830_v45 = vpop.f32.mrb[17].mxu1  ;;  %v6059_v38 = vld [vmem:[#allocation10 + $0x5b4] ss:$28 sps:$4 sm:$0xff]  }
 0x41d   :  { %v2790_v46 = vadd.f32 %v2789_v44, %v2580_v39  ;;  %v2831_v47 = vadd.f32 %v2830_v45, %v2588_v40  ;;  %v2791_v48 = vpop.f32.mrb[14].mxu0  ;;  %v2832_v49 = vpop.f32.mrb[18].mxu1  ;;  %v6062_v39 = vld [vmem:[#allocation10 + $0x5bc] ss:$28 sps:$4 sm:$0xff]   ;;  %v6057_v40 = vld [vmem:[#allocation10 + $0x5b0] ss:$28 sps:$4 sm:$0xff]  }
 0x41e   :  { %v2835_v50 = vmax.f32 %v2788_v43, 0.0  ;;  %v2792_v51 = vpop.f32.mrb[15].mxu0  ;;  %v2833_v52 = vpop.f32.mrb[19].mxu1  ;;  %v6060_v41 = vld [vmem:[#allocation10 + $0x5b8] ss:$28 sps:$4 sm:$0xff]  }
 0x41f   :  { %v2836_v53 = vmax.f32 %v2790_v46, 0.0  ;;  %v2838_v54 = vmax.f32 %v2831_v47, 0.0  ;;  %v6065_v43 = vld [vmem:[#allocation10 + $0x5ec] ss:$28 sps:$4 sm:$0xff]   ;;  %v6068_v44 = vld [vmem:[#allocation10 + $0x5f4] ss:$28 sps:$4 sm:$0xff]  }
 0x420   :  { %v6688_v60 = vpack.c.bf16 %v2835_v50, %v2835_v50  ;;  %v6063_v45 = vld [vmem:[#allocation10 + $0x5e8] ss:$28 sps:$4 sm:$0xff]   ;;  %v6066_v46 = vld [vmem:[#allocation10 + $0x5f0] ss:$28 sps:$4 sm:$0xff]   ;;  %v6069_v49 = vld [vmem:[#allocation10 + $0x620] ss:$28 sps:$4 sm:$0xff]  }
 0x421   :  { %v6686_v55 = vpack.c.bf16 %v2836_v53, %v2836_v53  ;;  %v6692_v63 = vpack.c.bf16 %v2838_v54, %v2838_v54  ;;  %v6071_v47 = vld [vmem:[#allocation10 + $0x624] ss:$28 sps:$4 sm:$0xff]   ;;  %v6074_v48 = vld [vmem:[#allocation10 + $0x62c] ss:$28 sps:$4 sm:$0xff]   ;;  %v6077_v51 = vld [vmem:[#allocation10 + $0x65c] ss:$28 sps:$4 sm:$0xff]  }
 0x422   :  { %v6072_v50 = vld [vmem:[#allocation10 + $0x628] ss:$28 sps:$4 sm:$0xff]   ;;  %v6075_v53 = vld [vmem:[#allocation10 + $0x658] ss:$28 sps:$4 sm:$0xff]   ;;  %v6078_v54 = vld [vmem:[#allocation10 + $0x660] ss:$28 sps:$4 sm:$0xff]  }
 0x423   :  { %4320 = vmatprep.mubr.bf16.mxu0 %v6686_v55  ;;  %4402 = vmatprep.mubr.bf16.mxu1 %v6686_v55  ;;  %v6080_v52 = vld [vmem:[#allocation10 + $0x664] ss:$28 sps:$4 sm:$0xff]  }
 0x424   :  { %4321 = vmatmul.mubr.bf16.vlgmr.msra.gmra.mrb[16].mxu0 %v6688_v60  ;;  %4403 = vmatmul.mubr.bf16.vlgmr.msra.gmra.mrb[20].mxu1 %v6688_v60 }
 0x425   :  { %4330 = vmatpush1.bf16.msra.mxu0 %v5997_v58  ;;  %4412 = vmatpush1.bf16.msra.mxu1 %v6000_v59  ;;  %v2584_v58 = vrot.slane %v6676_v37, %v6656_v56  ;;  %v6083_v59 = vld [vmem:[#allocation10 + $0x694] ss:$28 sps:$4 sm:$0xff]  }
 0x426   :  { %4361 = vmatprep.mubr.bf16.mxu0 %v6692_v63  ;;  %4443 = vmatprep.mubr.bf16.mxu1 %v6692_v63  ;;  %v6095_v37 = vld [vmem:[#allocation10 + $0x14] ss:$28 sps:$4 sm:$0xff]  }
 0x427   :  { %4331 = vmatprep.subr.bf16.mxu0 %v6005_v61  ;;  %4413 = vmatprep.subr.bf16.mxu1 %v6008_v62  ;;  %v6086_v61 = vld [vmem:[#allocation10 + $0x69c] ss:$28 sps:$4 sm:$0xff]   ;;  %v6081_v62 = vld [vmem:[#allocation10 + $0x690] ss:$28 sps:$4 sm:$0xff]  }
 0x429   :  { %4332 = vmatpush1.bf16.msra.mxu0 %v6003_v1  ;;  %4414 = vmatpush1.bf16.msra.mxu1 %v6006_v2  ;;  %v6084_v1 = vld [vmem:[#allocation10 + $0x698] ss:$28 sps:$4 sm:$0xff]   ;;  %v2829_v2 = vadd.f32 %v6684_v42, %v2584_v58  ;;  %v6151_v58 = vld [vmem:[#allocation10 + $0x600] ss:$28 sps:$4 sm:$0xff]  }
 0x42a   :  { %4333 = vmatprep.subr.bf16.mxu0 %v6011_v3  ;;  %4415 = vmatprep.subr.bf16.mxu1 %v6014_v4  ;;  %v6089_v3 = vld [vmem:[#allocation10 + $0x6cc] ss:$28 sps:$4 sm:$0xff]   ;;  %v6092_v4 = vld [vmem:[#allocation10 + $0x6d4] ss:$28 sps:$4 sm:$0xff]  }
 0x42b   :  { %v6097_v42 = vld [vmem:[#allocation10 + $0x18] ss:$28 sps:$4 sm:$0xff]  }
 0x42d   :  { %4334 = vmatpush1.bf16.msra.mxu0 %v6009_v5  ;;  %4416 = vmatpush1.bf16.msra.mxu1 %v6012_v6  ;;  %v6087_v5 = vld [vmem:[#allocation10 + $0x6c8] ss:$28 sps:$4 sm:$0xff]   ;;  %v6090_v6 = vld [vmem:[#allocation10 + $0x6d0] ss:$28 sps:$4 sm:$0xff]  }
 0x42e   :  { %4335 = vmatprep.subr.bf16.mxu0 %v6017_v7  ;;  %4417 = vmatprep.subr.bf16.mxu1 %v6020_v8  ;;  %v2837_v7 = vmax.f32 %v2829_v2, 0.0  ;;  %v6096_v8 = vld [vmem:[#allocation10 + $0x1d8] ss:$28 sps:$4 sm:$0xff]   ;;  %v6153_v2 = vld [vmem:[#allocation10 + $0x2b0] ss:$28 sps:$4 sm:$0xff]  }
 0x431   :  { %4336 = vmatpush1.bf16.msra.mxu0 %v6015_v9  ;;  %4418 = vmatpush1.bf16.msra.mxu1 %v6018_v10  ;;  %v6093_v9 = vld [vmem:[#allocation10 + $0x10] ss:$28 sps:$4 sm:$0xff]   ;;  %v6701_v10 = vpack.c.bf16 %v2837_v7, %v2837_v7 }
 0x432   :  { %4337 = vmatprep.subr.bf16.mxu0 %v6023_v11  ;;  %4419 = vmatprep.subr.bf16.mxu1 %v6026_v12  ;;  %v6100_v11 = vld [vmem:[#allocation10 + $0x4c] ss:$28 sps:$4 sm:$0xff]  }
 0x433   :  { %v6101_v12 = vld [vmem:[#allocation10 + $0x210] ss:$28 sps:$4 sm:$0xff]  }
 0x434   :  { %v6162_v7 = vld [vmem:[#allocation10 + $0x4b0] ss:$28 sps:$4 sm:$0xff]  }
 0x435   :  { %4338 = vmatpush1.bf16.msra.mxu0 %v6021_v13  ;;  %4420 = vmatpush1.bf16.msra.mxu1 %v6024_v14  ;;  %v6098_v13 = vld [vmem:[#allocation10 + $0x48] ss:$28 sps:$4 sm:$0xff]   ;;  %v6102_v14 = vld [vmem:[#allocation10 + $0x50] ss:$28 sps:$4 sm:$0xff]  }
 0x436   :  { %4339 = vmatprep.subr.bf16.mxu0 %v6029_v15  ;;  %4421 = vmatprep.subr.bf16.mxu1 %v6032_v17  ;;  %v6105_v15 = vld [vmem:[#allocation10 + $0x84] ss:$28 sps:$4 sm:$0xff]  }
 0x437   :  { %v6106_v17 = vld [vmem:[#allocation10 + $0x248] ss:$28 sps:$4 sm:$0xff]  }
 0x439   :  { %4340 = vmatpush1.bf16.msra.mxu0 %v6027_v18  ;;  %4422 = vmatpush1.bf16.msra.mxu1 %v6030_v19  ;;  %v6103_v18 = vld [vmem:[#allocation10 + $0x80] ss:$28 sps:$4 sm:$0xff]   ;;  %v6107_v19 = vld [vmem:[#allocation10 + $0x88] ss:$28 sps:$4 sm:$0xff]  }
 0x43a   :  { %4341 = vmatprep.subr.bf16.mxu0 %v6035_v20  ;;  %4423 = vmatprep.subr.bf16.mxu1 %v6038_v21  ;;  %v6110_v20 = vld [vmem:[#allocation10 + $0xbc] ss:$28 sps:$4 sm:$0xff]  }
 0x43b   :  { %v6111_v21 = vld [vmem:[#allocation10 + $0x280] ss:$28 sps:$4 sm:$0xff]  }
 0x43d   :  { %4342 = vmatpush1.bf16.msra.mxu0 %v6033_v22  ;;  %4424 = vmatpush1.bf16.msra.mxu1 %v6036_v23  ;;  %v6108_v22 = vld [vmem:[#allocation10 + $0xb8] ss:$28 sps:$4 sm:$0xff]   ;;  %v6112_v23 = vld [vmem:[#allocation10 + $0xc0] ss:$28 sps:$4 sm:$0xff]  }
 0x43e   :  { %4343 = vmatprep.subr.bf16.mxu0 %v6041_v26  ;;  %4425 = vmatprep.subr.bf16.mxu1 %v6044_v28  ;;  %v6115_v26 = vld [vmem:[#allocation10 + $0xf4] ss:$28 sps:$4 sm:$0xff]  }
 0x43f   :  { %v6113_v28 = vld [vmem:[#allocation10 + $0xf0] ss:$28 sps:$4 sm:$0xff]  }
 0x441   :  { %4344 = vmatpush1.bf16.msra.mxu0 %v6039_v16  ;;  %4426 = vmatpush1.bf16.msra.mxu1 %v6042_v29  ;;  %v6117_v16 = vld [vmem:[#allocation10 + $0xf8] ss:$28 sps:$4 sm:$0xff]   ;;  %v6120_v29 = vld [vmem:[#allocation10 + $0x12c] ss:$28 sps:$4 sm:$0xff]  }
 0x442   :  { %4345 = vmatprep.subr.bf16.mxu0 %v6047_v30  ;;  %4427 = vmatprep.subr.bf16.mxu1 %v6050_v31  ;;  %v6121_v30 = vld [vmem:[#allocation10 + $0x2f0] ss:$28 sps:$4 sm:$0xff]   ;;  %v6118_v31 = vld [vmem:[#allocation10 + $0x128] ss:$28 sps:$4 sm:$0xff]  }
 0x445   :  { %4346 = vmatpush1.bf16.msra.mxu0 %v6045_v32  ;;  %4428 = vmatpush1.bf16.msra.mxu1 %v6048_v33  ;;  %v6122_v32 = vld [vmem:[#allocation10 + $0x130] ss:$28 sps:$4 sm:$0xff]   ;;  %v6125_v33 = vld [vmem:[#allocation10 + $0x164] ss:$28 sps:$4 sm:$0xff]  }
 0x446   :  { %4347 = vmatprep.subr.bf16.mxu0 %v6053_v34  ;;  %4429 = vmatprep.subr.bf16.mxu1 %v6056_v35  ;;  %v6126_v34 = vld [vmem:[#allocation10 + $0x328] ss:$28 sps:$4 sm:$0xff]   ;;  %v6123_v35 = vld [vmem:[#allocation10 + $0x160] ss:$28 sps:$4 sm:$0xff]  }
 0x449   :  { %4348 = vmatpush1.bf16.msra.mxu0 %v6051_v0  ;;  %4430 = vmatpush1.bf16.msra.mxu1 %v6054_v36  ;;  %v6127_v0 = vld [vmem:[#allocation10 + $0x168] ss:$28 sps:$4 sm:$0xff]   ;;  %v6130_v36 = vld [vmem:[#allocation10 + $0x19c] ss:$28 sps:$4 sm:$0xff]  }
 0x44a   :  { %4349 = vmatprep.subr.bf16.mxu0 %v6059_v38  ;;  %4431 = vmatprep.subr.bf16.mxu1 %v6062_v39  ;;  %v6131_v38 = vld [vmem:[#allocation10 + $0x360] ss:$28 sps:$4 sm:$0xff]   ;;  %v6128_v39 = vld [vmem:[#allocation10 + $0x198] ss:$28 sps:$4 sm:$0xff]  }
 0x44d   :  { %4350 = vmatpush1.bf16.msra.mxu0 %v6057_v40  ;;  %4432 = vmatpush1.bf16.msra.mxu1 %v6060_v41  ;;  %v6132_v40 = vld [vmem:[#allocation10 + $0x1a0] ss:$28 sps:$4 sm:$0xff]   ;;  %v6135_v41 = vld [vmem:[#allocation10 + $0x1d4] ss:$28 sps:$4 sm:$0xff]  }
 0x44e   :  { %4351 = vmatprep.subr.bf16.mxu0 %v6065_v43  ;;  %4433 = vmatprep.subr.bf16.mxu1 %v6068_v44  ;;  %v6136_v43 = vld [vmem:[#allocation10 + $0x558] ss:$28 sps:$4 sm:$0xff]   ;;  %v6133_v44 = vld [vmem:[#allocation10 + $0x1d0] ss:$28 sps:$4 sm:$0xff]  }
 0x451   :  { %4352 = vmatpush1.bf16.msra.mxu0 %v6063_v45  ;;  %4434 = vmatpush1.bf16.msra.mxu1 %v6066_v46  ;;  %v6137_v45 = vld [vmem:[#allocation10 + $0x398] ss:$28 sps:$4 sm:$0xff]   ;;  %v6140_v46 = vld [vmem:[#allocation10 + $0x20c] ss:$28 sps:$4 sm:$0xff]  }
 0x452   :  { %4353 = vmatprep.subr.bf16.mxu0 %v6071_v47  ;;  %4435 = vmatprep.subr.bf16.mxu1 %v6074_v48  ;;  %v6141_v47 = vld [vmem:[#allocation10 + $0x590] ss:$28 sps:$4 sm:$0xff]   ;;  %v6138_v48 = vld [vmem:[#allocation10 + $0x208] ss:$28 sps:$4 sm:$0xff]  }
 0x455   :  { %4354 = vmatpush1.bf16.msra.mxu0 %v6069_v49  ;;  %4436 = vmatpush1.bf16.msra.mxu1 %v6072_v50  ;;  %v6142_v49 = vld [vmem:[#allocation10 + $0x3d0] ss:$28 sps:$4 sm:$0xff]   ;;  %v6145_v50 = vld [vmem:[#allocation10 + $0x244] ss:$28 sps:$4 sm:$0xff]  }
 0x456   :  { %4355 = vmatprep.subr.bf16.mxu0 %v6077_v51  ;;  %4437 = vmatprep.subr.bf16.mxu1 %v6080_v52  ;;  %v6146_v51 = vld [vmem:[#allocation10 + $0x5c8] ss:$28 sps:$4 sm:$0xff]   ;;  %v6143_v52 = vld [vmem:[#allocation10 + $0x240] ss:$28 sps:$4 sm:$0xff]  }
 0x459   :  { %4356 = vmatpush1.bf16.msra.mxu0 %v6075_v53  ;;  %4438 = vmatpush1.bf16.msra.mxu1 %v6078_v54  ;;  %v6147_v53 = vld [vmem:[#allocation10 + $0x408] ss:$28 sps:$4 sm:$0xff]   ;;  %v6150_v54 = vld [vmem:[#allocation10 + $0x27c] ss:$28 sps:$4 sm:$0xff]  }
 0x45a   :  { %4357 = vmatprep.subr.bf16.mxu0 %v6083_v59  ;;  %4439 = vmatprep.subr.bf16.mxu1 %v6086_v61  ;;  %v6148_v59 = vld [vmem:[#allocation10 + $0x278] ss:$28 sps:$4 sm:$0xff]   ;;  %v6152_v61 = vld [vmem:[#allocation10 + $0x440] ss:$28 sps:$4 sm:$0xff]  }
 0x45d   :  { %4358 = vmatpush1.bf16.msra.mxu0 %v6081_v62  ;;  %4440 = vmatpush1.bf16.msra.mxu1 %v6084_v1  ;;  %v6155_v62 = vld [vmem:[#allocation10 + $0x2b4] ss:$28 sps:$4 sm:$0xff]  }
 0x45e   :  { %4359 = vmatprep.subr.bf16.mxu0 %v6089_v3  ;;  %4441 = vmatprep.subr.bf16.mxu1 %v6092_v4  ;;  %v6156_v1 = vld [vmem:[#allocation10 + $0x638] ss:$28 sps:$4 sm:$0xff]   ;;  %v6160_v4 = vld [vmem:[#allocation10 + $0x2ec] ss:$28 sps:$4 sm:$0xff]  }
 0x45f   :  { %v6157_v3 = vld [vmem:[#allocation10 + $0x478] ss:$28 sps:$4 sm:$0xff]  }
 0x461   :  { %4360 = vmatpush1.bf16.msra.mxu0 %v6087_v5  ;;  %4442 = vmatpush1.bf16.msra.mxu1 %v6090_v6  ;;  %v6161_v5 = vld [vmem:[#allocation10 + $0x670] ss:$28 sps:$4 sm:$0xff]   ;;  %v6158_v6 = vld [vmem:[#allocation10 + $0x2e8] ss:$28 sps:$4 sm:$0xff]  }
 0x462   :  { %4452 = vmatprep.subr.bf16.mxu0 %v6095_v37  ;;  %5343 = vmatprep.subr.bf16.mxu1 %v6096_v8  ;;  %v6165_v37 = vld [vmem:[#allocation10 + $0x324] ss:$28 sps:$4 sm:$0xff]  }
 0x463   :  { %v6166_v8 = vld [vmem:[#allocation10 + $0x6a8] ss:$28 sps:$4 sm:$0xff]  }
 0x464   :  { %4362 = vmatmul.mubr.bf16.vlgmr.msra.gmra.mrb[16].mxu0 %v6701_v10  ;;  %4444 = vmatmul.mubr.bf16.vlgmr.msra.gmra.mrb[20].mxu1 %v6701_v10 }
 0x465   :  { %4453 = vmatpush1.bf16.msra.mxu0 %v6093_v9  ;;  %4484 = vmatprep.mubr.bf16.mxu0 %v6686_v55  ;;  %v6163_v9 = vld [vmem:[#allocation10 + $0x320] ss:$28 sps:$4 sm:$0xff]  }
 0x466   :  { %5344 = vmatpush3.bf16.msra.mxu1 %v6097_v42  ;;  %4566 = vmatprep.mubr.bf16.mxu1 %v6686_v55  ;;  %v6116_v55 = vld [vmem:[#allocation10 + $0x2b8] ss:$28 sps:$4 sm:$0xff]   ;;  %v6167_v42 = vld [vmem:[#allocation10 + $0x4e8] ss:$28 sps:$4 sm:$0xff]  }
 0x467   :  { %4454 = vmatprep.subr.bf16.mxu0 %v6100_v11  ;;  %5345 = vmatprep.subr.bf16.mxu1 %v6101_v12  ;;  %v6170_v11 = vld [vmem:[#allocation10 + $0x35c] ss:$28 sps:$4 sm:$0xff]  }
 0x468   :  { %v6171_v12 = vld [vmem:[#allocation10 + $0x6e0] ss:$28 sps:$4 sm:$0xff]  }
 0x469   :  { %4455 = vmatpush1.bf16.msra.mxu0 %v6098_v13  ;;  %v6168_v13 = vld [vmem:[#allocation10 + $0x358] ss:$28 sps:$4 sm:$0xff]  }
 0x46a   :  { %5346 = vmatpush3.bf16.msra.mxu1 %v6102_v14  ;;  %4456 = vmatprep.subr.bf16.mxu0 %v6105_v15  ;;  %v6172_v14 = vld [vmem:[#allocation10 + $0x520] ss:$28 sps:$4 sm:$0xff]   ;;  %v6175_v15 = vld [vmem:[#allocation10 + $0x394] ss:$28 sps:$4 sm:$0xff]  }
 0x46b   :  { %5347 = vmatprep.subr.bf16.mxu1 %v6106_v17  ;;  %v6173_v17 = vld [vmem:[#allocation10 + $0x390] ss:$28 sps:$4 sm:$0xff]  }
 0x46d   :  { %4457 = vmatpush1.bf16.msra.mxu0 %v6103_v18  ;;  %v6178_v18 = vld [vmem:[#allocation10 + $0x3cc] ss:$28 sps:$4 sm:$0xff]  }
 0x46e   :  { %5348 = vmatpush3.bf16.msra.mxu1 %v6107_v19  ;;  %4458 = vmatprep.subr.bf16.mxu0 %v6110_v20  ;;  %v6176_v19 = vld [vmem:[#allocation10 + $0x3c8] ss:$28 sps:$4 sm:$0xff]  }
 0x46f   :  { %5349 = vmatprep.subr.bf16.mxu1 %v6111_v21  ;;  %v6181_v20 = vld [vmem:[#allocation10 + $0x404] ss:$28 sps:$4 sm:$0xff]  }
 0x470   :  { %v6179_v21 = vld [vmem:[#allocation10 + $0x400] ss:$28 sps:$4 sm:$0xff]  }
 0x471   :  { %4459 = vmatpush1.bf16.msra.mxu0 %v6108_v22  ;;  %v6184_v22 = vld [vmem:[#allocation10 + $0x43c] ss:$28 sps:$4 sm:$0xff]  }
 0x472   :  { %5350 = vmatpush3.bf16.msra.mxu1 %v6112_v23  ;;  %4460 = vmatprep.subr.bf16.mxu0 %v6115_v26  ;;  %v6182_v23 = vld [vmem:[#allocation10 + $0x438] ss:$28 sps:$4 sm:$0xff]  }
 0x473   :  { %5351 = vmatprep.subr.bf16.mxu1 %v6116_v55  ;;  %v6187_v26 = vld [vmem:[#allocation10 + $0x474] ss:$28 sps:$4 sm:$0xff]  }
 0x474   :  { %v6185_v55 = vld [vmem:[#allocation10 + $0x470] ss:$28 sps:$4 sm:$0xff]  }
 0x475   :  { %4461 = vmatpush1.bf16.msra.mxu0 %v6113_v28  ;;  %v6188_v28 = vld [vmem:[#allocation10 + $0x4a8] ss:$28 sps:$4 sm:$0xff]  }
 0x476   :  { %5352 = vmatpush3.bf16.msra.mxu1 %v6117_v16  ;;  %4462 = vmatprep.subr.bf16.mxu0 %v6120_v29  ;;  %v6193_v16 = vld [vmem:[#allocation10 + $0x4e4] ss:$28 sps:$4 sm:$0xff]   ;;  %v6196_v29 = vld [vmem:[#allocation10 + $0x51c] ss:$28 sps:$4 sm:$0xff]  }
 0x477   :  { %5353 = vmatprep.subr.bf16.mxu1 %v6121_v30  ;;  %v6194_v30 = vld [vmem:[#allocation10 + $0x518] ss:$28 sps:$4 sm:$0xff]  }
 0x479   :  { %4463 = vmatpush1.bf16.msra.mxu0 %v6118_v31  ;;  %v6199_v31 = vld [vmem:[#allocation10 + $0x554] ss:$28 sps:$4 sm:$0xff]  }
 0x47a   :  { %5354 = vmatpush3.bf16.msra.mxu1 %v6122_v32  ;;  %4464 = vmatprep.subr.bf16.mxu0 %v6125_v33  ;;  %v6197_v32 = vld [vmem:[#allocation10 + $0x550] ss:$28 sps:$4 sm:$0xff]  }
 0x47b   :  { %5355 = vmatprep.subr.bf16.mxu1 %v6126_v34  ;;  %v6202_v33 = vld [vmem:[#allocation10 + $0x58c] ss:$28 sps:$4 sm:$0xff]  }
 0x47c   :  { %v6200_v34 = vld [vmem:[#allocation10 + $0x588] ss:$28 sps:$4 sm:$0xff]  }
 0x47d   :  { %4465 = vmatpush1.bf16.msra.mxu0 %v6123_v35  ;;  %v6205_v35 = vld [vmem:[#allocation10 + $0x5c4] ss:$28 sps:$4 sm:$0xff]  }
 0x47e   :  { %5356 = vmatpush3.bf16.msra.mxu1 %v6127_v0  ;;  %4466 = vmatprep.subr.bf16.mxu0 %v6130_v36  ;;  %v6203_v0 = vld [vmem:[#allocation10 + $0x5c0] ss:$28 sps:$4 sm:$0xff]  }
 0x47f   :  { %5357 = vmatprep.subr.bf16.mxu1 %v6131_v38  ;;  %v6208_v36 = vld [vmem:[#allocation10 + $0x5fc] ss:$28 sps:$4 sm:$0xff]  }
 0x480   :  { %v6206_v38 = vld [vmem:[#allocation10 + $0x5f8] ss:$28 sps:$4 sm:$0xff]  }
 0x481   :  { %4467 = vmatpush1.bf16.msra.mxu0 %v6128_v39  ;;  %v6211_v39 = vld [vmem:[#allocation10 + $0x634] ss:$28 sps:$4 sm:$0xff]  }
 0x482   :  { %5358 = vmatpush3.bf16.msra.mxu1 %v6132_v40  ;;  %4468 = vmatprep.subr.bf16.mxu0 %v6135_v41  ;;  %v6209_v40 = vld [vmem:[#allocation10 + $0x630] ss:$28 sps:$4 sm:$0xff]  }
 0x483   :  { %5365 = vmatprep.subr.bf16.mxu1 %v6136_v43  ;;  %v6214_v41 = vld [vmem:[#allocation10 + $0x66c] ss:$28 sps:$4 sm:$0xff]  }
 0x484   :  { %v6212_v43 = vld [vmem:[#allocation10 + $0x668] ss:$28 sps:$4 sm:$0xff]  }
 0x485   :  { %4567 = vmatmul.mubr.bf16.vlgmr.msra.gmra.mrb[24].mxu1 %v6688_v60  ;;  %4469 = vmatpush1.bf16.msra.mxu0 %v6133_v44  ;;  %v6217_v44 = vld [vmem:[#allocation10 + $0x6a4] ss:$28 sps:$4 sm:$0xff]  }
 0x486   :  { %5366 = vmatpush3.bf16.msra.mxu1 %v6137_v45  ;;  %4606 = vmatprep.mubr.bf16.mxu1 %v6692_v63  ;;  %v6215_v45 = vld [vmem:[#allocation10 + $0x6a0] ss:$28 sps:$4 sm:$0xff]  }
 0x487   :  { %4470 = vmatprep.subr.bf16.mxu0 %v6140_v46  ;;  %5367 = vmatprep.subr.bf16.mxu1 %v6141_v47  ;;  %v6220_v46 = vld [vmem:[#allocation10 + $0x6dc] ss:$28 sps:$4 sm:$0xff]  }
 0x488   :  { %v6218_v47 = vld [vmem:[#allocation10 + $0x6d8] ss:$28 sps:$4 sm:$0xff]  }
 0x489   :  { %4471 = vmatpush1.bf16.msra.mxu0 %v6138_v48  ;;  %v6716_v48 = vld [vmem:[%s6779_s11] sm:$0xff]  ;;  %s6450_s11 = smov [#allocation12]  }
 0x48a   :  { %5368 = vmatpush3.bf16.msra.mxu1 %v6142_v49  ;;  %4472 = vmatprep.subr.bf16.mxu0 %v6145_v50  ;;  %v3104_v49 = vrot.slane %v6716_v48, %v6642_v25  ;;  %v3112_v50 = vrot.slane %v6716_v48, %v6656_v56  ;;  %s4674_s18 = sshll.u32 %s6450_s11, 4  ;;  %s4675_s18 = int_to_ptr.vmem [resolvable:$true] %s4674_s18 }
 0x48b   :  { %5369 = vmatprep.subr.bf16.mxu1 %v6146_v51  ;;  %v3108_v51 = vrot.slane %v6716_v48, %v6648_v27  ;;  %s6362_s6 = scalar_lea.vmem %s4675_s18, 128  ;;  %p6367_p13 = scmp.lt.s32.totalorder %s4675_s18, %s4675_s18 }
 0x48c   :  { %p6363_p12 = scmp.ne.s32.totalorder %s4675_s18, %s6362_s6  ;;  %p6368_p0 = scmp.lt.s32.totalorder %s6362_s6, %s6362_s6 }
 0x48d   :  { %4473 = vmatpush1.bf16.msra.mxu0 %v6143_v52  ;;  %v3116_v52 = vrot.slane %v6716_v48, %v6659_v57 }
 0x48e   :  { %5370 = vmatpush3.bf16.msra.mxu1 %v6147_v53  ;;  %4474 = vmatprep.subr.bf16.mxu0 %v6150_v54  ;;  %p6369_p1 = por %p6368_p0, %p6367_p13 }
 0x48f   :  { %5371 = vmatprep.subr.bf16.mxu1 %v6151_v58 }
 0x490   :  { %p6370_p2 = pnand %p6369_p1, %p6363_p12 }
 0x491   :  { %4475 = vmatpush1.bf16.msra.mxu0 %v6148_v59 }
 0x492   :  { %5372 = vmatpush3.bf16.msra.mxu1 %v6152_v61  ;;  %4476 = vmatprep.subr.bf16.mxu0 %v6155_v62 }
 0x493   :  { %5373 = vmatprep.subr.bf16.mxu1 %v6156_v1 }
 0x495   :  { %4477 = vmatpush1.bf16.msra.mxu0 %v6153_v2 }
 0x496   :  { %5374 = vmatpush3.bf16.msra.mxu1 %v6157_v3  ;;  %4478 = vmatprep.subr.bf16.mxu0 %v6160_v4 }
 0x497   :  { %5375 = vmatprep.subr.bf16.mxu1 %v6161_v5 }
 0x499   :  { %4479 = vmatpush1.bf16.msra.mxu0 %v6158_v6 }
 0x49a   :  { %5376 = vmatpush3.bf16.msra.mxu1 %v6162_v7  ;;  %4480 = vmatprep.subr.bf16.mxu0 %v6165_v37 }
 0x49b   :  { %5377 = vmatprep.subr.bf16.mxu1 %v6166_v8 }
 0x49d   :  { %4481 = vmatpush1.bf16.msra.mxu0 %v6163_v9 }
 0x49e   :  { %5378 = vmatpush3.bf16.msra.mxu1 %v6167_v42  ;;  %4482 = vmatprep.subr.bf16.mxu0 %v6170_v11 }
 0x49f   :  { %5379 = vmatprep.subr.bf16.mxu1 %v6171_v12 }
 0x4a1   :  { %4483 = vmatpush1.bf16.msra.mxu0 %v6168_v13 }
 0x4a2   :  { %5380 = vmatpush3.bf16.msra.mxu1 %v6172_v14  ;;  %4493 = vmatprep.subr.bf16.mxu0 %v6175_v15 }
 0x4a4   :  { %4485 = vmatmul.mubr.bf16.vlgmr.msra.gmra.mrb[20].mxu0 %v6688_v60  ;;  %v6190_v60 = vld [vmem:[#allocation10 + $0x4ac] ss:$28 sps:$4 sm:$0xff]  }
 0x4a5   :  { %4607 = vmatmul.mubr.bf16.vlgmr.msra.gmra.mrb[28].mxu1 %v6701_v10  ;;  %4494 = vmatpush1.bf16.msra.mxu0 %v6173_v17 }
 0x4a6   :  { %4525 = vmatprep.mubr.bf16.mxu0 %v6692_v63  ;;  %4495 = vmatprep.subr.bf16.mxu0 %v6178_v18  ;;  %v6191_v63 = vld [vmem:[#allocation10 + $0x4e0] ss:$28 sps:$4 sm:$0xff]  }
 0x4a9   :  { %4496 = vmatpush1.bf16.msra.mxu0 %v6176_v19 }
 0x4aa   :  { %4497 = vmatprep.subr.bf16.mxu0 %v6181_v20 }
 0x4ad   :  { %4498 = vmatpush1.bf16.msra.mxu0 %v6179_v21 }
 0x4ae   :  { %4499 = vmatprep.subr.bf16.mxu0 %v6184_v22 }
 0x4b1   :  { %4500 = vmatpush1.bf16.msra.mxu0 %v6182_v23 }
 0x4b2   :  { %4501 = vmatprep.subr.bf16.mxu0 %v6187_v26 }
 0x4b5   :  { %4502 = vmatpush1.bf16.msra.mxu0 %v6185_v55 }
 0x4b6   :  { %4503 = vmatprep.subr.bf16.mxu0 %v6190_v60 }
 0x4b9   :  { %4504 = vmatpush1.bf16.msra.mxu0 %v6188_v28 }
 0x4ba   :  { %4505 = vmatprep.subr.bf16.mxu0 %v6193_v16 }
 0x4bd   :  { %4506 = vmatpush1.bf16.msra.mxu0 %v6191_v63 }
 0x4be   :  { %4507 = vmatprep.subr.bf16.mxu0 %v6196_v29 }
 0x4c1   :  { %4508 = vmatpush1.bf16.msra.mxu0 %v6194_v30 }
 0x4c2   :  { %4509 = vmatprep.subr.bf16.mxu0 %v6199_v31 }
 0x4c5   :  { %4510 = vmatpush1.bf16.msra.mxu0 %v6197_v32 }
 0x4c6   :  { %4511 = vmatprep.subr.bf16.mxu0 %v6202_v33 }
 0x4c9   :  { %4512 = vmatpush1.bf16.msra.mxu0 %v6200_v34 }
 0x4ca   :  { %4513 = vmatprep.subr.bf16.mxu0 %v6205_v35 }
 0x4cd   :  { %4514 = vmatpush1.bf16.msra.mxu0 %v6203_v0 }
 0x4ce   :  { %4515 = vmatprep.subr.bf16.mxu0 %v6208_v36 }
 0x4d1   :  { %4516 = vmatpush1.bf16.msra.mxu0 %v6206_v38 }
 0x4d2   :  { %4517 = vmatprep.subr.bf16.mxu0 %v6211_v39 }
 0x4d5   :  { %4518 = vmatpush1.bf16.msra.mxu0 %v6209_v40 }
 0x4d6   :  { %4519 = vmatprep.subr.bf16.mxu0 %v6214_v41 }
 0x4d9   :  { %4520 = vmatpush1.bf16.msra.mxu0 %v6212_v43 }
 0x4da   :  { %4521 = vmatprep.subr.bf16.mxu0 %v6217_v44 }
 0x4dd   :  { %4522 = vmatpush1.bf16.msra.mxu0 %v6215_v45 }
 0x4de   :  { %4523 = vmatprep.subr.bf16.mxu0 %v6220_v46 }
 0x4e1   :  { %4524 = vmatpush1.bf16.msra.mxu0 %v6218_v47 }
 0x4e4   :  { %4526 = vmatmul.mubr.bf16.vlgmr.msra.gmra.mrb[20].mxu0 %v6701_v10 }
 0x537   :  { %v4363_v53 = vpop.f32.mrb[16].mxu0  ;;  %v4445_v54 = vpop.f32.mrb[20].mxu1 }
 0x538   :  { %v5393_v10 = vadd.f32 %v4363_v53, %v3104_v49  ;;  %v5395_v58 = vadd.f32 %v4445_v54, %v3112_v50  ;;  %v4365_v59 = vpop.f32.mrb[17].mxu0  ;;  %v4447_v61 = vpop.f32.mrb[21].mxu1 }
 0x539   :  { %v5394_v62 = vadd.f32 %v4365_v59, %v3108_v51  ;;  %v5396_v1 = vadd.f32 %v4447_v61, %v3116_v52  ;;  %v4367_v2 = vpop.f32.mrb[18].mxu0  ;;  %v4449_v3 = vpop.f32.mrb[22].mxu1 }
 0x53a   :  { %v4614_v25 = vsub.f32 0.0, %v5393_v10  ;;  %v4616_v4 = vsub.f32 0.0, %v5395_v58  ;;  %v4368_v5 = vpop.f32.mrb[19].mxu0  ;;  %v4450_v56 = vpop.f32.mrb[23].mxu1 }
 0x53b   :  { %v4615_v6 = vsub.f32 0.0, %v5394_v62  ;;  %v4617_v7 = vsub.f32 0.0, %v5396_v1 }
 0x53c   :  { %v4621_v27 = vmul.f32 1.442695, %v4614_v25  ;;  %v4625_v37 = vmul.f32 1.442695, %v4616_v4 }
 0x53d   :  { %v4623_v8 = vmul.f32 1.442695, %v4615_v6  ;;  %v4627_v57 = vmul.f32 1.442695, %v4617_v7 }
 0x53e   :  { %6223 = vpow2.f32 %v4621_v27 }
 0x53f   :  { %6225 = vpow2.f32 %v4625_v37 }
 0x540   :  { %6227 = vpow2.f32 %v4623_v8 }
 0x541   :  { %6229 = vpow2.f32 %v4627_v57 }
 0x548   :  { %v6224_v9 = vpop.eup %6223 }
 0x549   :  { %v6226_v42 = vpop.eup %6225  ;;  %v4635_v11 = vadd.f32 1.0, %v6224_v9 }
 0x54a   :  { %v6228_v12 = vpop.eup %6227  ;;  %v4637_v13 = vadd.f32 1.0, %v6226_v42 }
 0x54b   :  { %v6230_v14 = vpop.eup %6229  ;;  %6231 = vrcp.f32 %v4635_v11  ;;  %v4636_v15 = vadd.f32 1.0, %v6228_v12 }
 0x54c   :  { %6233 = vrcp.f32 %v4637_v13  ;;  %v4638_v17 = vadd.f32 1.0, %v6230_v14 }
 0x54d   :  { %6235 = vrcp.f32 %v4636_v15 }
 0x54e   :  { %6237 = vrcp.f32 %v4638_v17 }
 0x555   :  { %v6232_v18 = vpop.eup %6231 }
 0x556   :  { %v6234_v19 = vpop.eup %6233  ;;  %4649 = vst [vmem:[#allocation11] sm:$0xff] %v6232_v18 }
 0x557   :  { %v6236_v20 = vpop.eup %6235  ;;  %4651 = vst [vmem:[#allocation11 + $0x10] sm:$0xff] %v6234_v19 }
 0x558   :  { %v6238_v21 = vpop.eup %6237  ;;  %4650 = vst [vmem:[#allocation11 + $0x8] sm:$0xff] %v6236_v20  ;;  %v5359_v22 = vpop.f32.mrb[24].mxu1 }
 0x559   :  { %4652 = vst [vmem:[#allocation11 + $0x18] sm:$0xff] %v6238_v21  ;;  %v5360_v23 = vpop.f32.mrb[25].mxu1 }
 0x55a   :  { %6373 = shalt.err (!%p6370_p2)
}
 0x55b   :  { %s6374_s26 = scalar_lea.hbm %s6781_s13, 128 }
 0x55c   :  { %p6375_p3 = scmp.ne.s32.totalorder %s6781_s13, %s6374_s26  ;;  %p6378_p4 = scmp.lt.u32.totalorder %s6374_s26, %s6781_s13 }
 0x55e   :  { %p6380_p5 = pnand %p6378_p4, %p6375_p3 }
 0x560   :  { %6383 = shalt.err (!%p6380_p5)
}
 0x561   :  { %4677 = dma.vmem_to_hbm [thread:$0]  %s4675_s18, 128, %s6781_s13, [#allocation13]   ;;  %v5361_v26 = vadd.f32 %v5360_v23, %v5359_v22  ;;  %v5362_v55 = vpop.f32.mrb[26].mxu1 }
 0x562   :  { %v5363_v60 = vpop.f32.mrb[27].mxu1  ;;  %s6451_s2 = smov [#allocation14]  }
 0x563   :  { %s4684_s15 = sshll.u32 %s6451_s2, 4  ;;  %s4685_s15 = int_to_ptr.vmem [resolvable:$true] %s4684_s15 }
 0x564   :  { %s6384_s30 = scalar_lea.vmem %s4685_s15, 128  ;;  %p6389_p7 = scmp.lt.s32.totalorder %s4685_s15, %s4685_s15 }
 0x565   :  { %p6385_p6 = scmp.ne.s32.totalorder %s4685_s15, %s6384_s30  ;;  %p6390_p8 = scmp.lt.s32.totalorder %s6384_s30, %s6384_s30 }
 0x567   :  { %p6391_p9 = por %p6390_p8, %p6389_p7 }
 0x569   :  { %p6392_p10 = pnand %p6391_p9, %p6385_p6 }
 0x56b   :  { %6395 = shalt.err (!%p6392_p10)
}
 0x56c   :  { %s6396_s8 = scalar_lea.hbm %s6782_s14, 128 }
 0x56d   :  { %p6397_p11 = scmp.ne.s32.totalorder %s6782_s14, %s6396_s8  ;;  %p6400_p12 = scmp.lt.u32.totalorder %s6396_s8, %s6782_s14 }
 0x56f   :  { %p6402_p13 = pnand %p6400_p12, %p6397_p11 }
 0x571   :  { %6405 = shalt.err (!%p6402_p13)
}
 0x572   :  { %4687 = dma.vmem_to_hbm [thread:$0]  %s4685_s15, 128, %s6782_s14, [#allocation13]   ;;  %v3127_v28 = vsub.s32 6, %v6639_v24  ;;  %v3119_v40 = vsub.s32 4, %v6639_v24  ;;  %v3123_v41 = vsub.s32 5, %v6639_v24 }
 0x573   :  { %s6452_s14 = smov [#allocation11]  }
 0x574   :  { %v3128_v16 = vrot.slane %v6716_v48, %v3127_v28  ;;  %v3120_v43 = vrot.slane %v6716_v48, %v3119_v40  ;;  %v3124_v44 = vrot.slane %v6716_v48, %v3123_v41  ;;  %s4664_s16 = sshll.u32 %s6452_s14, 4  ;;  %s4665_s16 = int_to_ptr.vmem [resolvable:$true] %s4664_s16 }
 0x575   :  { %s6406_s1 = scalar_lea.vmem %s4665_s16, 896  ;;  %p6411_p1 = scmp.lt.s32.totalorder %s4665_s16, %s4665_s16 }
 0x576   :  { %v4569_v30 = vadd.f32 %v5361_v26, %v3128_v16  ;;  %p6407_p0 = scmp.ne.s32.totalorder %s4665_s16, %s6406_s1  ;;  %p6412_p2 = scmp.lt.s32.totalorder %s6406_s1, %s6406_s1 }
 0x578   :  { %v5381_v63 = vpop.f32.mrb[28].mxu1  ;;  %p6413_p3 = por %p6412_p2, %p6411_p1 }
 0x579   :  { %v5382_v29 = vpop.f32.mrb[29].mxu1 }
 0x57a   :  { %v5383_v31 = vadd.f32 %v5382_v29, %v5381_v63  ;;  %v5384_v32 = vpop.f32.mrb[30].mxu1  ;;  %p6414_p4 = pnand %p6413_p3, %p6407_p0 }
 0x57b   :  { %v5385_v33 = vpop.f32.mrb[31].mxu1 }
 0x57c   :  { %v4609_v34 = vadd.f32 %v5383_v31, %v4569_v30 }
 0x57e   :  { %v4620_v35 = vsub.f32 0.0, %v4609_v34 }
 0x580   :  { %v4633_v0 = vmul.f32 1.442695, %v4620_v35 }
 0x582   :  { %6239 = vpow2.f32 %v4633_v0 }
 0x58c   :  { %v6240_v36 = vpop.eup %6239 }
 0x58d   :  { %v4641_v38 = vadd.f32 1.0, %v6240_v36 }
 0x58f   :  { %6241 = vrcp.f32 %v4641_v38 }
 0x599   :  { %v6242_v39 = vpop.eup %6241 }
 0x59a   :  { %4655 = vst [vmem:[#allocation11 + $0x30] sm:$0xff] %v6242_v39 }
 0x5b7   :  { %v4527_v45 = vpop.f32.mrb[20].mxu0 }
 0x5b8   :  { %v5397_v46 = vadd.f32 %v4527_v45, %v3120_v43  ;;  %v4529_v47 = vpop.f32.mrb[21].mxu0 }
 0x5b9   :  { %v5398_v49 = vadd.f32 %v4529_v47, %v3124_v44  ;;  %v4531_v50 = vpop.f32.mrb[22].mxu0 }
 0x5ba   :  { %v4618_v51 = vsub.f32 0.0, %v5397_v46  ;;  %v4532_v52 = vpop.f32.mrb[23].mxu0 }
 0x5bb   :  { %v4619_v53 = vsub.f32 0.0, %v5398_v49 }
 0x5bc   :  { %v4629_v54 = vmul.f32 1.442695, %v4618_v51 }
 0x5bd   :  { %v4631_v10 = vmul.f32 1.442695, %v4619_v53 }
 0x5be   :  { %6243 = vpow2.f32 %v4629_v54 }
 0x5bf   :  { %6245 = vpow2.f32 %v4631_v10 }
 0x5c8   :  { %v6244_v58 = vpop.eup %6243 }
 0x5c9   :  { %v6246_v59 = vpop.eup %6245  ;;  %v4639_v61 = vadd.f32 1.0, %v6244_v58 }
 0x5ca   :  { %v4640_v24 = vadd.f32 1.0, %v6246_v59 }
 0x5cb   :  { %6247 = vrcp.f32 %v4639_v61 }
 0x5cc   :  { %6249 = vrcp.f32 %v4640_v24 }
 0x5d5   :  { %v6248_v48 = vpop.eup %6247 }
 0x5d6   :  { %v6250_v62 = vpop.eup %6249  ;;  %4653 = vst [vmem:[#allocation11 + $0x20] sm:$0xff] %v6248_v48 }
 0x5d7   :  { %4654 = vst [vmem:[#allocation11 + $0x28] sm:$0xff] %v6250_v62 }
 0x5d8   :  { %6417 = shalt.err (!%p6414_p4)
}
 0x5d9   :  { %s6418_s17 = scalar_lea.hbm %s6780_s12, 896 }
 0x5da   :  { %p6419_p5 = scmp.ne.s32.totalorder %s6780_s12, %s6418_s17  ;;  %p6422_p6 = scmp.lt.u32.totalorder %s6418_s17, %s6780_s12 }
 0x5dc   :  { %p6424_p7 = pnand %p6422_p6, %p6419_p5 }
 0x5de   :  { %6427 = shalt.err (!%p6424_p7)
}
 0x5df   :  { %4667 = dma.vmem_to_hbm [thread:$0]  %s4665_s16, 896, %s6780_s12, [#allocation4]  }
 0x5e0   :  { %6434 = dma.done.wait [#allocation4], 896  }
 0x5e1   :  { %6435 = vsyncadd [#allocation4], 4294966400 }
 0x5e2   :  { %6436 = dma.done.wait [#allocation13], 256  }
 0x5e3   :  { %6437 = vsyncadd [#allocation13], 4294967040 }
 0x5e4   :  { %4697 = vsyncpa [#allocation3], 1 }
 0x5e5   :  { %4698 = vsyncpa [#allocation6], 1 }
 0x5e6   :  { %4699 = vsyncpa [#allocation9], 1 }
 0x5e7   :  { %4700 = vsyncpa [#allocation4], 1 }
 0x5e8   :  { %4701 = vsyncpa [#allocation13], 1 }

</bundles_post_ra>
